<compile_context>
chip_gen: v7x
topology: tpu7x:2x2x1
jax: 0.10.0
libtpu: 0.0.40
codegen_flags: <defaults>
</compile_context>

<pallas_src>
import jax
import jax.numpy as jnp
from jax import lax
from jax.experimental import pallas as pl
from jax.experimental.pallas import tpu as pltpu

jax.config.update("jax_default_matmul_precision", "highest")

_PREC = lax.Precision.HIGHEST


def _predict_kernel(x_ref, u1_ref, u2_ref, w1x_ref, w1u_ref, b1_ref, w2_ref,
                    b2_ref, o_ref):
    # x_ref: [1, tn, emb] item tile of batch b; u*_ref: [1, 1, emb].
    x = x_ref[0]                                  # [tn, emb]
    w1x = w1x_ref[...]                            # [emb, hid] (item half of W1)
    w1u = w1u_ref[...]                            # [emb, hid] (user half of W1)
    b1 = b1_ref[...]                              # [1, hid]
    w2 = w2_ref[...]                              # [1, hid]
    b2 = b2_ref[...]                              # [1, 1]

    # Item-side projection, shared by both user variants.
    hx = jnp.dot(x, w1x, preferred_element_type=jnp.float32, precision=_PREC)

    # User-side projections: [1, emb] @ [emb, hid] -> [1, hid], broadcast-add.
    hu1 = jnp.dot(u1_ref[0], w1u, preferred_element_type=jnp.float32,
                  precision=_PREC)
    hu2 = jnp.dot(u2_ref[0], w1u, preferred_element_type=jnp.float32,
                  precision=_PREC)

    h1 = jnp.maximum(hx + hu1 + b1, 0.0)          # [tn, hid]
    h2 = jnp.maximum(hx + hu2 + b1, 0.0)

    # Second Linear: contract hidden axis against W2 as a [1, hid] row so the
    # result is a lane-dense [1, tn] row (no masked [tn, 1] column stores).
    dn = (((1,), (1,)), ((), ()))
    l1 = lax.dot_general(w2, h1, dn, preferred_element_type=jnp.float32,
                         precision=_PREC) + b2
    l2 = lax.dot_general(w2, h2, dn, preferred_element_type=jnp.float32,
                         precision=_PREC) + b2

    o_ref[0] = jnp.concatenate(
        [jax.nn.sigmoid(l1), jax.nn.sigmoid(l2)], axis=0)   # [2, tn]


def _round_up(a, b):
    return (a + b - 1) // b * b


def predict_module_forward(user_spf1, user_spf2, i_feat, params, *, tn_max=512):
    """Returns (logits_d1, logits_d2), each squeeze([bs, N])."""
    w1u, w1x, b1, w2, b2 = params
    bs, n_items, emb = i_feat.shape
    hid = w1u.shape[1]

    # 128-aligned item tile, capped at tn_max; pad items (no divisibility req).
    tn = min(max(128, (tn_max // 128) * 128), _round_up(n_items, 128))
    n_pad = _round_up(n_items, tn)
    pad = n_pad - n_items
    x = jnp.pad(i_feat, ((0, 0), (0, pad), (0, 0))) if pad else i_feat

    u1 = user_spf1.reshape(bs, 1, emb)
    u2 = user_spf2.reshape(bs, 1, emb)
    w2_row = w2.reshape(1, hid)

    grid = (bs, n_pad // tn)
    full = lambda b, j: (0, 0)

    out = pl.pallas_call(
        _predict_kernel,
        out_shape=jax.ShapeDtypeStruct((bs, 2, n_pad), jnp.float32),
        grid_spec=pltpu.PrefetchScalarGridSpec(
            num_scalar_prefetch=0,
            grid=grid,
            in_specs=[
                pl.BlockSpec((1, tn, emb), lambda b, j: (b, j, 0)),   # i_feat
                pl.BlockSpec((1, 1, emb), lambda b, j: (b, 0, 0)),    # user1
                pl.BlockSpec((1, 1, emb), lambda b, j: (b, 0, 0)),    # user2
                pl.BlockSpec((emb, hid), full),                       # W1 item
                pl.BlockSpec((emb, hid), full),                       # W1 user
                pl.BlockSpec((1, hid), full),                         # b1
                pl.BlockSpec((1, hid), full),                         # W2 row
                pl.BlockSpec((1, 1), full),                           # b2
            ],
            out_specs=pl.BlockSpec((1, 2, tn), lambda b, j: (b, 0, j)),
        ),
        compiler_params=pltpu.CompilerParams(
            dimension_semantics=("parallel", "parallel")),
    )(x, u1, u2, w1x, w1u, b1, w2_row, b2)

    out = out[:, :, :n_items]                 # drop item padding
    logits_d1 = jnp.squeeze(out[:, 0, :])     # matches torch .squeeze()
    logits_d2 = jnp.squeeze(out[:, 1, :])
    return logits_d1, logits_d2


def init_params(key, emb_dim, hid_dim):
    """Deterministic synthetic parameters; shapes match the nn.Linear layers."""
    k1, k2, k3, k4 = jax.random.split(key, 4)
    scale1 = 1.0 / jnp.sqrt(2.0 * emb_dim)
    scale2 = 1.0 / jnp.sqrt(float(hid_dim))
    w1 = jax.random.uniform(k1, (2 * emb_dim, hid_dim), jnp.float32, -scale1, scale1)
    b1 = jax.random.uniform(k2, (1, hid_dim), jnp.float32, -scale1, scale1)
    w2 = jax.random.uniform(k3, (hid_dim, 1), jnp.float32, -scale2, scale2)
    b2 = jax.random.uniform(k4, (1, 1), jnp.float32, -scale2, scale2)
    # torch concatenates (user, item) along the feature axis, so split W1 into
    # the user half (rows 0:emb) and the item half (rows emb:2emb).
    return w1[:emb_dim], w1[emb_dim:], b1, w2, b2


def _reference(user_spf1, user_spf2, i_feat, params):
    w1u, w1x, b1, w2, b2 = params
    w1 = jnp.concatenate([w1u, w1x], axis=0)

    def fc(u, x):
        cat = jnp.concatenate([jnp.broadcast_to(u[:, None, :], x.shape), x], -1)
        h = jnp.maximum(cat @ w1 + b1[0], 0.0)
        return jax.nn.sigmoid(h @ w2 + b2[0])

    return jnp.squeeze(fc(user_spf1, i_feat)), jnp.squeeze(fc(user_spf2, i_feat))


if __name__ == "__main__":
    emb_dim, hid_dim = 32, 32
    bs, n_items = 2, 8            # N items per user (1 train / 99 test in torch)

    key = jax.random.PRNGKey(0)
    kp, ku1, ku2, ki = jax.random.split(key, 4)
    params = init_params(kp, emb_dim, hid_dim)

    user_spf1 = jax.random.normal(ku1, (bs, emb_dim), jnp.float32)
    user_spf2 = jax.random.normal(ku2, (bs, emb_dim), jnp.float32)
    i_feat = jax.random.normal(ki, (bs, n_items, emb_dim), jnp.float32)

    logits_d1, logits_d2 = predict_module_forward(user_spf1, user_spf2, i_feat,
                                                  params)
    jax.block_until_ready((logits_d1, logits_d2))

    ref_d1, ref_d2 = _reference(user_spf1, user_spf2, i_feat, params)
    assert logits_d1.shape == (bs, n_items) and logits_d2.shape == (bs, n_items)
    assert jnp.allclose(logits_d1, ref_d1, atol=1e-5)
    assert jnp.allclose(logits_d2, ref_d2, atol=1e-5)

    print("KERNEL_OK")
</pallas_src>

<mosaic_0001>
module attributes {stable_mosaic.version = 11 : i64} {
  func.func @_predict_kernel(%arg0: i32, %arg1: i32, %arg2: memref<1x128x32xf32, #tpu.memory_space<vmem>>, %arg3: memref<1x1x32xf32, #tpu.memory_space<vmem>>, %arg4: memref<1x1x32xf32, #tpu.memory_space<vmem>>, %arg5: memref<32x32xf32, #tpu.memory_space<vmem>>, %arg6: memref<32x32xf32, #tpu.memory_space<vmem>>, %arg7: memref<1x32xf32, #tpu.memory_space<vmem>>, %arg8: memref<1x32xf32, #tpu.memory_space<vmem>>, %arg9: memref<1x1xf32, #tpu.memory_space<vmem>>, %arg10: memref<1x2x128xf32, #tpu.memory_space<vmem>>) attributes {dimension_semantics = [#tpu.dimension_semantics<parallel>, #tpu.dimension_semantics<parallel>], iteration_bounds = array<i64: 2, 1>, scalar_prefetch = 0 : i64, scratch_operands = 0 : i64, tpu.core_type = #tpu.core_type<tc>, window_params = [{transform_indices = @transform_0, window_bounds = array<i64: 1, 128, 32>}, {transform_indices = @transform_1, window_bounds = array<i64: 1, 1, 32>}, {transform_indices = @transform_2, window_bounds = array<i64: 1, 1, 32>}, {pipeline_mode = #tpu.pipeline_mode<synchronous>, transform_indices = @transform_3, window_bounds = array<i64: 32, 32>}, {pipeline_mode = #tpu.pipeline_mode<synchronous>, transform_indices = @transform_4, window_bounds = array<i64: 32, 32>}, {pipeline_mode = #tpu.pipeline_mode<synchronous>, transform_indices = @transform_5, window_bounds = array<i64: 1, 32>}, {pipeline_mode = #tpu.pipeline_mode<synchronous>, transform_indices = @transform_6, window_bounds = array<i64: 1, 32>}, {pipeline_mode = #tpu.pipeline_mode<synchronous>, transform_indices = @transform_7, window_bounds = array<i64: 1, 1>}, {transform_indices = @transform_8, window_bounds = array<i64: 1, 2, 128>}]} {
    %c0 = arith.constant 0 : index
    %c0_0 = arith.constant 0 : index
    %c0_1 = arith.constant 0 : index
    %0 = vector.load %arg2[%c0, %c0_0, %c0_1] : memref<1x128x32xf32, #tpu.memory_space<vmem>>, vector<1x128x32xf32>
    %1 = vector.shape_cast %0 : vector<1x128x32xf32> to vector<128x32xf32>
    %c0_2 = arith.constant 0 : index
    %c0_3 = arith.constant 0 : index
    %2 = vector.load %arg5[%c0_2, %c0_3] : memref<32x32xf32, #tpu.memory_space<vmem>>, vector<32x32xf32>
    %c0_4 = arith.constant 0 : index
    %c0_5 = arith.constant 0 : index
    %3 = vector.load %arg6[%c0_4, %c0_5] : memref<32x32xf32, #tpu.memory_space<vmem>>, vector<32x32xf32>
    %c0_6 = arith.constant 0 : index
    %c0_7 = arith.constant 0 : index
    %4 = vector.load %arg7[%c0_6, %c0_7] : memref<1x32xf32, #tpu.memory_space<vmem>>, vector<1x32xf32>
    %c0_8 = arith.constant 0 : index
    %c0_9 = arith.constant 0 : index
    %5 = vector.load %arg8[%c0_8, %c0_9] : memref<1x32xf32, #tpu.memory_space<vmem>>, vector<1x32xf32>
    %c0_10 = arith.constant 0 : index
    %c0_11 = arith.constant 0 : index
    %6 = vector.load %arg9[%c0_10, %c0_11] : memref<1x1xf32, #tpu.memory_space<vmem>>, vector<1x1xf32>
    %cst = arith.constant dense<0.000000e+00> : vector<128x32xf32>
    %7 = tpu.matmul %1, %2, %cst {dimension_numbers = #tpu.dot_dimension_numbers<[1], [0], [0], [1], [0, 0, 1, 1], [], []>, precision = #tpu.contract_precision<fp32>} : vector<128x32xf32>, vector<32x32xf32>, vector<128x32xf32> -> vector<128x32xf32>
    %c0_12 = arith.constant 0 : index
    %c0_13 = arith.constant 0 : index
    %c0_14 = arith.constant 0 : index
    %8 = vector.load %arg3[%c0_12, %c0_13, %c0_14] : memref<1x1x32xf32, #tpu.memory_space<vmem>>, vector<1x1x32xf32>
    %9 = vector.shape_cast %8 : vector<1x1x32xf32> to vector<1x32xf32>
    %cst_15 = arith.constant dense<0.000000e+00> : vector<1x32xf32>
    %10 = tpu.matmul %9, %3, %cst_15 {dimension_numbers = #tpu.dot_dimension_numbers<[1], [0], [0], [1], [0, 0, 1, 1], [], []>, precision = #tpu.contract_precision<fp32>} : vector<1x32xf32>, vector<32x32xf32>, vector<1x32xf32> -> vector<1x32xf32>
    %c0_16 = arith.constant 0 : index
    %c0_17 = arith.constant 0 : index
    %c0_18 = arith.constant 0 : index
    %11 = vector.load %arg4[%c0_16, %c0_17, %c0_18] : memref<1x1x32xf32, #tpu.memory_space<vmem>>, vector<1x1x32xf32>
    %12 = vector.shape_cast %11 : vector<1x1x32xf32> to vector<1x32xf32>
    %cst_19 = arith.constant dense<0.000000e+00> : vector<1x32xf32>
    %13 = tpu.matmul %12, %3, %cst_19 {dimension_numbers = #tpu.dot_dimension_numbers<[1], [0], [0], [1], [0, 0, 1, 1], [], []>, precision = #tpu.contract_precision<fp32>} : vector<1x32xf32>, vector<32x32xf32>, vector<1x32xf32> -> vector<1x32xf32>
    %14 = vector.broadcast %10 : vector<1x32xf32> to vector<128x32xf32>
    %15 = arith.addf %7, %14 : vector<128x32xf32>
    %16 = vector.broadcast %4 : vector<1x32xf32> to vector<128x32xf32>
    %17 = arith.addf %15, %16 : vector<128x32xf32>
    %cst_20 = arith.constant 0.000000e+00 : f32
    %18 = vector.broadcast %cst_20 : f32 to vector<128x32xf32>
    %19 = arith.maximumf %17, %18 : vector<128x32xf32>
    %20 = vector.broadcast %13 : vector<1x32xf32> to vector<128x32xf32>
    %21 = arith.addf %7, %20 : vector<128x32xf32>
    %22 = vector.broadcast %4 : vector<1x32xf32> to vector<128x32xf32>
    %23 = arith.addf %21, %22 : vector<128x32xf32>
    %cst_21 = arith.constant 0.000000e+00 : f32
    %24 = vector.broadcast %cst_21 : f32 to vector<128x32xf32>
    %25 = arith.maximumf %23, %24 : vector<128x32xf32>
    %cst_22 = arith.constant dense<0.000000e+00> : vector<1x128xf32>
    %26 = tpu.matmul %5, %19, %cst_22 {dimension_numbers = #tpu.dot_dimension_numbers<[1], [1], [0], [0], [0, 0, 1, 0], [], []>, precision = #tpu.contract_precision<fp32>} : vector<1x32xf32>, vector<128x32xf32>, vector<1x128xf32> -> vector<1x128xf32>
    %27 = vector.broadcast %6 : vector<1x1xf32> to vector<1x128xf32>
    %28 = arith.addf %26, %27 : vector<1x128xf32>
    %cst_23 = arith.constant dense<0.000000e+00> : vector<1x128xf32>
    %29 = tpu.matmul %5, %25, %cst_23 {dimension_numbers = #tpu.dot_dimension_numbers<[1], [1], [0], [0], [0, 0, 1, 0], [], []>, precision = #tpu.contract_precision<fp32>} : vector<1x32xf32>, vector<128x32xf32>, vector<1x128xf32> -> vector<1x128xf32>
    %30 = vector.broadcast %6 : vector<1x1xf32> to vector<1x128xf32>
    %31 = arith.addf %29, %30 : vector<1x128xf32>
    %32 = arith.negf %28 : vector<1x128xf32>
    %33 = math.exp %32 : vector<1x128xf32>
    %cst_24 = arith.constant 1.000000e+00 : f32
    %34 = vector.broadcast %cst_24 : f32 to vector<1x128xf32>
    %35 = arith.addf %34, %33 : vector<1x128xf32>
    %36 = arith.divf %34, %35 : vector<1x128xf32>
    %37 = arith.negf %31 : vector<1x128xf32>
    %38 = math.exp %37 : vector<1x128xf32>
    %cst_25 = arith.constant 1.000000e+00 : f32
    %39 = vector.broadcast %cst_25 : f32 to vector<1x128xf32>
    %40 = arith.addf %39, %38 : vector<1x128xf32>
    %41 = arith.divf %39, %40 : vector<1x128xf32>
    %42 = tpu.concatenate %36, %41 in 0 : vector<1x128xf32>, vector<1x128xf32> -> vector<2x128xf32>
    %c0_26 = arith.constant 0 : index
    %c0_27 = arith.constant 0 : index
    %c0_28 = arith.constant 0 : index
    %43 = vector.load %arg10[%c0_26, %c0_27, %c0_28] : memref<1x2x128xf32, #tpu.memory_space<vmem>>, vector<1x2x128xf32>
    %44 = vector.shape_cast %43 : vector<1x2x128xf32> to vector<2x128xf32>
    %45 = vector.shape_cast %42 : vector<2x128xf32> to vector<1x2x128xf32>
    tpu.vector_store %arg10[%c0_26, %c0_27, %c0_28], %45 {strides = array<i32>} : memref<1x2x128xf32, #tpu.memory_space<vmem>>, vector<1x2x128xf32>,
    return
  }
  func.func @transform_0(%arg0: i32, %arg1: i32) -> (i32, i32, i32) {
    %c0_i32 = arith.constant 0 : i32
    %c0_i32_0 = arith.constant 0 : i32
    return %arg0, %arg1, %c0_i32 : i32, i32, i32
  }
  func.func @transform_1(%arg0: i32, %arg1: i32) -> (i32, i32, i32) {
    %c0_i32 = arith.constant 0 : i32
    %c0_i32_0 = arith.constant 0 : i32
    %c0_i32_1 = arith.constant 0 : i32
    return %arg0, %c0_i32, %c0_i32_0 : i32, i32, i32
  }
  func.func @transform_2(%arg0: i32, %arg1: i32) -> (i32, i32, i32) {
    %c0_i32 = arith.constant 0 : i32
    %c0_i32_0 = arith.constant 0 : i32
    %c0_i32_1 = arith.constant 0 : i32
    return %arg0, %c0_i32, %c0_i32_0 : i32, i32, i32
  }
  func.func @transform_3(%arg0: i32, %arg1: i32) -> (i32, i32) {
    %c0_i32 = arith.constant 0 : i32
    %c0_i32_0 = arith.constant 0 : i32
    %c0_i32_1 = arith.constant 0 : i32
    return %c0_i32, %c0_i32_0 : i32, i32
  }
  func.func @transform_4(%arg0: i32, %arg1: i32) -> (i32, i32) {
    %c0_i32 = arith.constant 0 : i32
    %c0_i32_0 = arith.constant 0 : i32
    %c0_i32_1 = arith.constant 0 : i32
    return %c0_i32, %c0_i32_0 : i32, i32
  }
  func.func @transform_5(%arg0: i32, %arg1: i32) -> (i32, i32) {
    %c0_i32 = arith.constant 0 : i32
    %c0_i32_0 = arith.constant 0 : i32
    %c0_i32_1 = arith.constant 0 : i32
    return %c0_i32, %c0_i32_0 : i32, i32
  }
  func.func @transform_6(%arg0: i32, %arg1: i32) -> (i32, i32) {
    %c0_i32 = arith.constant 0 : i32
    %c0_i32_0 = arith.constant 0 : i32
    %c0_i32_1 = arith.constant 0 : i32
    return %c0_i32, %c0_i32_0 : i32, i32
  }
  func.func @transform_7(%arg0: i32, %arg1: i32) -> (i32, i32) {
    %c0_i32 = arith.constant 0 : i32
    %c0_i32_0 = arith.constant 0 : i32
    %c0_i32_1 = arith.constant 0 : i32
    return %c0_i32, %c0_i32_0 : i32, i32
  }
  func.func @transform_8(%arg0: i32, %arg1: i32) -> (i32, i32, i32) {
    %c0_i32 = arith.constant 0 : i32
    %c0_i32_0 = arith.constant 0 : i32
    return %arg0, %c0_i32, %arg1 : i32, i32, i32
  }
}

</mosaic_0001>

<bundles_post_ra>
// kernel: tpu_custom_call.1
= control target key start
LH: loop header
LB: loop body
LE: loop exit
PB: predicated region body
PF: predicated region fallthrough
CT: control target
= control target key end

     0   :  { %s7699_s0 = inlined_call_operand.vmem [shape: f32[2,128,32], index: 0, kind: input, shape index: {}]   ;;  %s7700_s1 = inlined_call_operand.vmem [shape: f32[2,1,32], index: 1, kind: input, shape index: {}]   ;;  %s7701_s2 = inlined_call_operand.vmem [shape: f32[2,1,32], index: 2, kind: input, shape index: {}]   ;;  %s7702_s3 = inlined_call_operand.vmem [shape: f32[32,32], index: 3, kind: input, shape index: {}]   ;;  %s7703_s4 = inlined_call_operand.vmem [shape: f32[32,32], index: 4, kind: input, shape index: {}]   ;;  %s7704_s5 = inlined_call_operand.vmem [shape: f32[1,32], index: 5, kind: input, shape index: {}]   ;;  %s7705_s6 = inlined_call_operand.vmem [shape: f32[1,32], index: 6, kind: input, shape index: {}]   ;;  %s7706_s7 = inlined_call_operand.<no memory space> [shape: f32[1,1], index: 7, kind: input, shape index: {}]   ;;  %s7707_s8 = inlined_call_operand.hbm [shape: f32[2,2,128], index: 8, kind: output, shape index: {}]  }
   0x1   :  { %v13_v0 = vstv %s7706_s7 }
   0x2   :  { %14 = vst [vmem:[#allocation2] sm:$0x1] %v13_v0 }
   0x3   :  { %15 = vsyncpa [#allocation4], 0 }
   0x4   :  { %17 = vsyncpa [#allocation4 + $0x1], 0  ;;  %s6048_s29 = smov 0   ;;  %s6050_s30 = smov 0  }
   0x5   :  { %s6052_s9 = smov 0   ;;  %s6054_s10 = smov 0  }
   0x6   :  { %s6056_s11 = smov 0   ;;  %s6058_s12 = smov 0  }
   0x7 LB: > { %s4173_s7 = sadd.s32 4294967295, %s5993_s12   ;;  %s4174_s13 = sadd.s32 4294967294, %s5993_s12   ;;  %s5993_s12 = sphi %s6058_s12, %s23_s12   ;;  %s5989_s11 = sphi %s6056_s11, %s7976_s11   ;;  %s5985_s10 = sphi %s6054_s10, %s7975_s10   ;;  %s5981_s9 = sphi %s6052_s9, %s7974_s9   ;;  %s5977_s30 = sphi %s6050_s30, %s7973_s30   ;;  %s5973_s29 = sphi %s6048_s29, %s7972_s29  }
   0x8   : > { %s35_s14 = sadd.s32 1, %s5989_s11  ;;  %s229_s15 = sadd.s32 1, %s5981_s9 }
   0x9   : > { %p37_p0 = scmp.ge.s32.totalorder %s35_s14, 2  ;;  %p239_p1 = scmp.ne.s32.totalorder %s5981_s9, %s5977_s30 }
   0xa   : > { %p240_p2 = scmp.eq.s32.totalorder %s4173_s7, 1  ;;  %p245_p3 = scmp.ne.s32.totalorder %s5977_s30, %s5973_s29 }
   0xb   : > { %s7978_s14 = smov (%p37_p0, %s35_s14), 0  ;;  %p246_p5 = scmp.eq.s32.totalorder %s4174_s13, 1 }
   0xc   : > { %p6088_p4 = por %p240_p2, %p239_p1  ;;  %s224_s17 = ssub.s32 %s5989_s11, %s7978_s14 }
   0xd   : > { %p4177_p6 = scmp.ge.s32.totalorder %s5993_s12, 1  ;;  %p227_p7 = scmp.eq.s32.totalorder %s224_s17, 0 }
   0xe   : > { %p6095_p8 = por %p246_p5, %p245_p3  ;;  %p304_p9 = scmp.lt.s32.totalorder %s5993_s12, 3 }
   0xf   : > { %s6101_s19 = scalar_select %p227_p7, %s5981_s9, %s229_s15  }
  0x10   : > { %p305_p10 = pnand %p4177_p6, %p304_p9 }
  0x12   : > { %308 = sbr.rel (%p305_p10) target bundleno = 1070 (0x42e), region = 52 }
  0x19   : > { %v380_v1 = vld [vmem:[%s7702_s3] sm:$0xff]  ;;  %v381_v2 = vld [vmem:[%s7702_s3 + $0x8] sm:$0xff]  ;;  %v382_v3 = vld [vmem:[%s7702_s3 + $0x10] sm:$0xff]  ;;  %p349_p11 = scmp.lt.s32.totalorder %s5985_s10, 1  ;;  %vm391_vm0 = vcmask 261120   ;;  %v7743_v57 = vmov 0.0|0.0  }
  0x1a   : > { %v441_v4 = vand.u32 4294901760, %v380_v1  ;;  %v444_v5 = vand.u32 4294901760, %v381_v2  ;;  %v383_v6 = vld [vmem:[%s7702_s3 + $0x18] sm:$0xff]  ;;  %v447_v7 = vand.u32 4294901760, %v382_v3  ;;  %v6119_v8 = vld [vmem:[%s7703_s4] sm:$0xff]  ;;  %v6124_v9 = vld [vmem:[%s7703_s4 + $0x8] sm:$0xff] }
  0x1b   : > { %v450_v10 = vand.u32 4294901760, %v383_v6  ;;  %s6127_s17 = scalar_select %p349_p11, %s5985_s10, 1  ;;  %v1575_v11 = vand.u32 4294901760, %v6119_v8  ;;  %v1578_v12 = vand.u32 4294901760, %v6124_v9  ;;  %v6134_v13 = vld [vmem:[%s7703_s4 + $0x10] sm:$0xff]  ;;  %v6147_v18 = vld [vmem:[%s7703_s4 + $0x18] sm:$0xff] }
  0x1c   : > { %v6136_v14 = vpack.c.bf16 %v444_v5, %v441_v4  ;;  %v6138_v15 = vsub.f32 %v380_v1, %v441_v4  ;;  %v6140_v16 = vsub.f32 %v381_v2, %v444_v5  ;;  %v6142_v17 = vsub.f32 %v382_v3, %v447_v7  ;;  %s345_s25 = sand.u32 1, %s5977_s30  }
  0x1d   : > { %v6149_v19 = vpack.c.bf16 %v450_v10, %v447_v7  ;;  %v6151_v20 = vsub.f32 %v383_v6, %v450_v10  ;;  %s4188_s24 = sshll.u32 %s6127_s17, 7  ;;  %v6158_v21 = vpack.c.bf16 %v1578_v12, %v1575_v11  ;;  %v1581_v25 = vand.u32 4294901760, %v6134_v13  ;;  %s360_s13 = scalar_lea.vmem %s7700_s1, %s6127_s17 }
  0x1e   : > { %5318 = vmatprep.subr.bf16.mxu1 %v6136_v14  ;;  %v7720_v22 = vand.u32 4294901760, %v6138_v15  ;;  %v7719_v23 = vand.u32 4294901760, %v6140_v16  ;;  %v686_v24 = vand.u32 4294901760, %v6142_v17  ;;  %s6167_s27 = scalar_lea.vmem %s7699_s0, %s4188_s24  ;;  %v6176_v29 = vpack.c.bf16 %v6140_v16, %v6138_v15  ;;  %s363_s21 = scalar_lea.vmem %s7701_s2, %s6127_s17 }
  0x1f   : > { %5320 = vmatpush3.bf16.msra.mxu1 %v6136_v14  ;;  %v7722_v26 = vand.u32 4294901760, %v6151_v20  ;;  %v364_v27 = vld [vmem:[%s6167_s27] sm:$0xff]  ;;  %v365_v28 = vld [vmem:[%s6167_s27 + $0x8] sm:$0xff]  ;;  %v366_v30 = vld [vmem:[%s6167_s27 + $0x10] sm:$0xff]  ;;  %v6181_v31 = vpack.c.bf16 %v6151_v20, %v6142_v17  ;;  %v1584_v32 = vand.u32 4294901760, %v6147_v18  ;;  %vm5996_vm1 = vmmov 0  }
  0x20   : > { %v673_v33 = vsub.f32 %v6138_v15, %v7720_v22  ;;  %v680_v34 = vsub.f32 %v6140_v16, %v7719_v23  ;;  %5322 = vmatprep.subr.bf16.mxu1 %v6149_v19  ;;  %v687_v35 = vsub.f32 %v6142_v17, %v686_v24  ;;  %v393_v36 = vsel %vm391_vm0, %v364_v27, 0  ;;  %v367_v37 = vld [vmem:[%s6167_s27 + $0x18] sm:$0xff]  ;;  %v368_v42 = vld [vmem:[%s6167_s27 + $0x20] sm:$0xff]  ;;  %v369_v51 = vld [vmem:[%s6167_s27 + $0x28] sm:$0xff]  ;;  %s4178_s26 = sshll.u32 %s345_s25, 1  ;;  %s5999_s17 = smov [#allocation3]  }
  0x21   : > { %v694_v38 = vsub.f32 %v6151_v20, %v7722_v26  ;;  %v6199_v39 = vand.u32 4294901760, %v393_v36  ;;  %v396_v40 = vsel %vm391_vm0, %v365_v28, 0  ;;  %v399_v41 = vsel %vm391_vm0, %v366_v30, 0  ;;  %v370_v52 = vld [vmem:[%s6167_s27 + $0x30] sm:$0xff]  ;;  %v371_v62 = vld [vmem:[%s6167_s27 + $0x38] sm:$0xff]  ;;  %v372_v30 = vld [vmem:[%s6167_s27 + $0x40] sm:$0xff] }
  0x22   : > { %v674_v43 = vand.u32 4294901760, %v673_v33  ;;  %v681_v44 = vand.u32 4294901760, %v680_v34  ;;  %v688_v45 = vand.u32 4294901760, %v687_v35  ;;  %v6204_v46 = vand.u32 4294901760, %v396_v40  ;;  %s347_s28 = scalar_lea.vmem [#allocation3], %s4178_s26  ;;  %s5919_s22 = sshll.u32 %s5999_s17, 4  ;;  %s5920_s22 = int_to_ptr.vmem [resolvable:$false] %s5919_s22 }
  0x23   : > { %5324 = vmatpush3.bf16.msra.mxu1 %v6149_v19  ;;  %v695_v47 = vand.u32 4294901760, %v694_v38  ;;  %v6208_v48 = vsub.f32 %v393_v36, %v6199_v39  ;;  %4613 = vmatprep.mubr.f32.mxu0 %v6199_v39  ;;  %v6211_v49 = vand.u32 4294901760, %v399_v41  ;;  %v402_v50 = vsel %vm391_vm0, %v367_v37, 0  ;;  %s4081_s7 = sshll.u32 %s347_s28, 4  ;;  %s5921_s23 = scalar_lea.vmem %s5920_s22, 64  ;;  %s7654_s7 = int_to_ptr.vmem [resolvable:$true] %s4081_s7 }
  0x24   : > { %v5325_v53 = vpack.c.bf16 %v681_v44, %v674_v43  ;;  %v6217_v54 = vsub.f32 %v396_v40, %v6204_v46  ;;  %v6219_v55 = vand.u32 4294901760, %v402_v50  ;;  %v405_v56 = vsel %vm391_vm0, %v368_v42, 0  ;;  %5365 = vmatprep.subr.bf16.mxu1 %v7743_v57  ;;  %v373_v42 = vld [vmem:[%s6167_s27 + $0x48] sm:$0xff]  ;;  %v374_v43 = vld [vmem:[%s6167_s27 + $0x50] sm:$0xff]  ;;  %p5922_p1 = scmp.lt.s32.totalorder %s7654_s7, %s5920_s22 }
  0x25   : > { %v5329_v58 = vpack.c.bf16 %v695_v47, %v688_v45  ;;  %v7718_v59 = vand.u32 4294901760, %v6208_v48  ;;  %v6225_v60 = vsub.f32 %v399_v41, %v6211_v49  ;;  %v6227_v61 = vand.u32 4294901760, %v405_v56 }
  0x26   : > { %5326 = vmatprep.subr.bf16.mxu0 %v5325_v53  ;;  %v7716_v63 = vand.u32 4294901760, %v6217_v54  ;;  %v6232_v0 = vsub.f32 %v402_v50, %v6219_v55  ;;  %v408_v1 = vsel %vm391_vm0, %v369_v51, 0  ;;  %v411_v2 = vsel %vm391_vm0, %v370_v52, 0 }
  0x27   : > { %5328 = vmatpush3.bf16.msra.mxu0 %v5325_v53  ;;  %v512_v3 = vsub.f32 %v6208_v48, %v7718_v59  ;;  %v7714_v4 = vand.u32 4294901760, %v6225_v60  ;;  %v6241_v5 = vsub.f32 %v405_v56, %v6227_v61  ;;  %v6243_v6 = vand.u32 4294901760, %v408_v1 }
  0x28   : > { %5330 = vmatprep.subr.bf16.mxu0 %v5329_v58  ;;  %v522_v7 = vsub.f32 %v6217_v54, %v7716_v63  ;;  %v7712_v10 = vand.u32 4294901760, %v6232_v0  ;;  %v6249_v27 = vand.u32 4294901760, %v411_v2  ;;  %v414_v28 = vsel %vm391_vm0, %v371_v62, 0  ;;  %v376_v62 = vld [vmem:[%s6167_s27 + $0x60] sm:$0xff] }
  0x29   : > { %v513_v33 = vand.u32 4294901760, %v512_v3  ;;  %v532_v34 = vsub.f32 %v6225_v60, %v7714_v4  ;;  %v7711_v35 = vand.u32 4294901760, %v6241_v5  ;;  %v6258_v36 = vsub.f32 %v408_v1, %v6243_v6  ;;  %v1570_v63 = vld [vmem:[%s360_s13] sm:$0x1] }
  0x2a   : > { %v523_v37 = vand.u32 4294901760, %v522_v7  ;;  %v542_v38 = vsub.f32 %v6232_v0, %v7712_v10  ;;  %v6264_v40 = vsub.f32 %v411_v2, %v6249_v27  ;;  %v6266_v41 = vand.u32 4294901760, %v414_v28 }
  0x2b   : > { %4581 = vmatprep.mubr.f32.mxu1 %v513_v33  ;;  %5332 = vmatpush3.bf16.msra.mxu0 %v5329_v58  ;;  %v533_v44 = vand.u32 4294901760, %v532_v34  ;;  %v552_v45 = vsub.f32 %v6241_v5, %v7711_v35  ;;  %v7710_v47 = vand.u32 4294901760, %v6258_v36  ;;  %v417_v50 = vsel %vm391_vm0, %v372_v30, 0  ;;  %v375_v58 = vld [vmem:[%s6167_s27 + $0x58] sm:$0xff] }
  0x2c   : > { %4582 = vmatmul.mubr.f32.vlgmr.msra.gmra.mrb[0].mxu1 %v523_v37  ;;  %5334 = vmatprep.subr.bf16.mxu0 %v6176_v29  ;;  %v543_v51 = vand.u32 4294901760, %v542_v38  ;;  %v7708_v52 = vand.u32 4294901760, %v6264_v40  ;;  %v6278_v53 = vsub.f32 %v414_v28, %v6266_v41  ;;  %v6280_v56 = vand.u32 4294901760, %v417_v50  ;;  %v377_v37 = vld [vmem:[%s6167_s27 + $0x68] sm:$0xff] }
  0x2d   : > { %4584 = vmatprep.mubr.f32.mxu1 %v533_v44  ;;  %v553_v1 = vand.u32 4294901760, %v552_v45  ;;  %v562_v2 = vsub.f32 %v6258_v36, %v7710_v47  ;;  %5367 = vmatpush3.bf16.msra.mxu1 %v6158_v21  ;;  %v420_v3 = vsel %vm391_vm0, %v373_v42, 0  ;;  %v423_v7 = vsel %vm391_vm0, %v374_v43, 0 }
  0x2e   : > { %4614 = vmatmul.mubr.f32.vlgmr.msra.gmra.mrb[0].mxu0 %v6204_v46  ;;  %v572_v28 = vsub.f32 %v6264_v40, %v7708_v52  ;;  %v7709_v30 = vand.u32 4294901760, %v6278_v53  ;;  %v6296_v33 = vsub.f32 %v417_v50, %v6280_v56  ;;  %v6298_v34 = vand.u32 4294901760, %v420_v3  ;;  %5368 = vmatprep.subr.bf16.mxu1 %v7743_v57 }
  0x2f   : > { %5336 = vmatpush3.bf16.msra.mxu0 %v6176_v29  ;;  %4616 = vmatprep.mubr.f32.mxu0 %v6211_v49  ;;  %v563_v38 = vand.u32 4294901760, %v562_v2  ;;  %v6304_v42 = vand.u32 4294901760, %v423_v7  ;;  %v426_v43 = vsel %vm391_vm0, %v375_v58, 0  ;;  %v429_v44 = vsel %vm391_vm0, %v376_v62, 0  ;;  %v378_v2 = vld [vmem:[%s6167_s27 + $0x70] sm:$0xff] }
  0x30   : > { %4585 = vmatmul.mubr.f32.gmra.mrb[2].mxu1 %v543_v51  ;;  %v573_v45 = vand.u32 4294901760, %v572_v28  ;;  %v582_v50 = vsub.f32 %v6278_v53, %v7709_v30  ;;  %v7713_v52 = vand.u32 4294901760, %v6296_v33  ;;  %v6313_v29 = vsub.f32 %v420_v3, %v6298_v34  ;;  %5338 = vmatprep.subr.bf16.mxu0 %v6181_v31 }
  0x31   : > { %4587 = vmatprep.mubr.f32.mxu1 %v553_v1  ;;  %v6318_v58 = vsub.f32 %v423_v7, %v6304_v42  ;;  %v6320_v51 = vand.u32 4294901760, %v426_v43  ;;  %v6322_v62 = vand.u32 4294901760, %v429_v44  ;;  %v432_v28 = vsel %vm391_vm0, %v377_v37, 0  ;;  %v379_v7 = vld [vmem:[%s6167_s27 + $0x78] sm:$0xff]  ;;  %s4185_s27 = sshll.u32 %s5985_s10, 5  ;;  %s5915_s10 = scalar_lea.vmem %s7654_s7, 32 }
  0x32   : > { %4617 = vmatmul.mubr.f32.gmra.mrb[2].mxu0 %v6219_v55  ;;  %v583_v30 = vand.u32 4294901760, %v582_v50  ;;  %v592_v3 = vsub.f32 %v6296_v33, %v7713_v52  ;;  %v7715_v47 = vand.u32 4294901760, %v6313_v29  ;;  %v6330_v1 = vand.u32 4294901760, %v432_v28  ;;  %s7652_s20 = scalar_lea.hbm %s7707_s8, %s4185_s27  ;;  %p5916_p12 = scmp.ne.s32.totalorder %s7654_s7, %s5915_s10 }
  0x33   : > { %4619 = vmatprep.mubr.f32.mxu0 %v6227_v61  ;;  %v7717_v35 = vand.u32 4294901760, %v6318_v58  ;;  %5340 = vmatpush3.bf16.msra.mxu0 %v6181_v31  ;;  %v6337_v37 = vsub.f32 %v426_v43, %v6320_v51  ;;  %v6340_v50 = vsub.f32 %v429_v44, %v6322_v62  ;;  %v435_v10 = vsel %vm391_vm0, %v378_v2, 0  ;;  %p5923_p2 = scmp.lt.s32.totalorder %s5921_s23, %s5915_s10 }
  0x34   : > { %4588 = vmatmul.mubr.f32.gmra.mrb[4].mxu1 %v563_v38  ;;  %v593_v52 = vand.u32 4294901760, %v592_v3  ;;  %v602_v4 = vsub.f32 %v6313_v29, %v7715_v47  ;;  %v6351_v31 = vsub.f32 %v432_v28, %v6330_v1  ;;  %v6353_v43 = vand.u32 4294901760, %v435_v10  ;;  %5342 = vmatprep.subr.bf16.mxu0 %v6136_v14  ;;  %p5917_p13 = pnand %p5916_p12, %p6088_p4 }
  0x35   : > { %4590 = vmatprep.mubr.f32.mxu1 %v573_v45  ;;  %v612_v44 = vsub.f32 %v6318_v58, %v7717_v35  ;;  %v7721_v2 = vand.u32 4294901760, %v6337_v37  ;;  %v7723_v38 = vand.u32 4294901760, %v6340_v50  ;;  %v438_v3 = vsel %vm391_vm0, %v379_v7, 0  ;;  %p5924_p3 = por %p5923_p2, %p5922_p1 }
  0x36   : > { %4620 = vmatmul.mubr.f32.gmra.mrb[4].mxu0 %v6243_v6  ;;  %v6364_v28 = vsub.f32 %v435_v10, %v6353_v43  ;;  %v6366_v47 = vand.u32 4294901760, %v438_v3  ;;  %v7724_v35 = vand.u32 4294901760, %v6351_v31  ;;  %v6377_v7 = vpack.c.bf16 %v1584_v32, %v1581_v25  ;;  %p5918_p0 = pneg %p5917_p13 }
  0x37   : > { %4622 = vmatprep.mubr.f32.mxu0 %v6249_v27  ;;  %v622_v45 = vsub.f32 %v6337_v37, %v7721_v2  ;;  %v603_v10 = vand.u32 4294901760, %v602_v4  ;;  %v632_v59 = vsub.f32 %v6340_v50, %v7723_v38  ;;  %v613_v2 = vand.u32 4294901760, %v612_v44 }
  0x38   : > { %4591 = vmatmul.mubr.f32.gmra.mrb[6].mxu1 %v583_v30  ;;  %v7726_v23 = vand.u32 4294901760, %v6364_v28  ;;  %v6384_v22 = vsub.f32 %v438_v3, %v6366_v47  ;;  %v1572_v26 = vsel %vm391_vm0, %v1570_v63, 0  ;;  %v6391_v30 = vsub.f32 %v6119_v8, %v1575_v11  ;;  %p5925_p5 = pnand %p5924_p3, %p5918_p0 }
  0x39   : > { %4593 = vmatprep.mubr.f32.mxu1 %v593_v52  ;;  %5370 = vmatpush3.bf16.msra.mxu1 %v6377_v7  ;;  %v6395_v4 = vand.u32 4294901760, %v1572_v26  ;;  %v623_v3 = vand.u32 4294901760, %v622_v45  ;;  %v642_v52 = vsub.f32 %v6351_v31, %v7724_v35  ;;  %v6404_v63 = vsub.f32 %v6124_v9, %v1578_v12 }
  0x3a   : > { %4623 = vmatmul.mubr.f32.gmra.mrb[6].mxu0 %v6266_v41  ;;  %5371 = vmatprep.subr.bf16.mxu1 %v7743_v57  ;;  %v633_v8 = vand.u32 4294901760, %v632_v59  ;;  %v652_v11 = vsub.f32 %v6364_v28, %v7726_v23  ;;  %v7725_v44 = vand.u32 4294901760, %v6384_v22  ;;  %v1656_v45 = vand.u32 4294901760, %v6391_v30 }
  0x3b   : > { %4625 = vmatprep.mubr.f32.mxu0 %v6280_v56  ;;  %v6411_v38 = vsub.f32 %v1572_v26, %v6395_v4  ;;  %v7727_v35 = vand.u32 4294901760, %v6404_v63  ;;  %v6418_v9 = vsub.f32 %v6134_v13, %v1581_v25  ;;  %v6423_v12 = vsub.f32 %v6147_v18, %v1584_v32 }
  0x3c   : > { %4594 = vmatmul.mubr.f32.gmra.mrb[8].mxu1 %v603_v10  ;;  %v643_v26 = vand.u32 4294901760, %v642_v52  ;;  %v653_v59 = vand.u32 4294901760, %v652_v11  ;;  %v1657_v13 = vsub.f32 %v6391_v30, %v1656_v45  ;;  %vm4063_vm2 = vcmask 1040384  }
  0x3d   : > { %4596 = vmatprep.mubr.f32.mxu1 %v613_v2  ;;  %v662_v2 = vsub.f32 %v6384_v22, %v7725_v44  ;;  %v1645_v10 = vand.u32 4294901760, %v6411_v38  ;;  %v1664_v18 = vsub.f32 %v6404_v63, %v7727_v35  ;;  %v1670_v25 = vand.u32 4294901760, %v6418_v9 }
  0x3e   : > { %4626 = vmatmul.mubr.f32.gmra.mrb[8].mxu0 %v6298_v34  ;;  %v1677_v32 = vand.u32 4294901760, %v6423_v12  ;;  %v1658_v44 = vand.u32 4294901760, %v1657_v13 }
  0x3f   : > { %4628 = vmatprep.mubr.f32.mxu0 %v6304_v42  ;;  %v1646_v11 = vsub.f32 %v6411_v38, %v1645_v10  ;;  %v1665_v23 = vand.u32 4294901760, %v1664_v18  ;;  %v1671_v35 = vsub.f32 %v6418_v9, %v1670_v25  ;;  %v6481_v18 = vpack.c.bf16 %v6404_v63, %v6391_v30 }
  0x40   : > { %4597 = vmatmul.mubr.f32.gmra.mrb[10].mxu1 %v623_v3  ;;  %v7812_v3 = vand.u32 4294901760, %v6151_v20  ;;  %v1678_v17 = vsub.f32 %v6423_v12, %v1677_v32  ;;  %v6530_v30 = vpack.c.bf16 %v1677_v32, %v1670_v25  ;;  %v7819_v25 = vand.u32 4294901760, %v6232_v0 }
  0x41   : > { %4599 = vmatprep.mubr.f32.mxu1 %v633_v8  ;;  %v663_v8 = vand.u32 4294901760, %v662_v2  ;;  %v1647_v20 = vand.u32 4294901760, %v1646_v11  ;;  %v7820_v32 = vand.u32 4294901760, %v6241_v5 }
  0x42   : > { %4629 = vmatmul.mubr.f32.gmra.mrb[10].mxu0 %v6320_v51  ;;  %v6444_v52 = vpack.c.bf16 %v7812_v3, %v686_v24  ;;  %v7728_v24 = vmov 0.0   ;;  %v1679_v2 = vand.u32 4294901760, %v1678_v17 }
  0x43   : > { %4631 = vmatprep.mubr.f32.mxu0 %v6322_v62 }
  0x44   : > { %4600 = vmatmul.mubr.f32.gmra.mrb[12].mxu1 %v643_v26  ;;  %v6460_v26 = vpack.c.bf16 %v1665_v23, %v1658_v44  ;;  %v7813_v23 = vand.u32 4294901760, %v6138_v15  ;;  %v6491_v15 = vpack.c.bf16 %v6423_v12, %v6418_v9  ;;  %v7817_v12 = vand.u32 4294901760, %v6217_v54 }
  0x45   : > { %4602 = vmatprep.mubr.f32.mxu1 %v653_v59  ;;  %v1672_v59 = vand.u32 4294901760, %v1671_v35  ;;  %v7814_v35 = vand.u32 4294901760, %v6140_v16  ;;  %v7815_v16 = vand.u32 4294901760, %v6404_v63 }
  0x46   : > { %4632 = vmatmul.mubr.f32.gmra.mrb[12].mxu0 %v6330_v1 }
  0x47   : > { %4634 = vmatprep.mubr.f32.mxu0 %v6353_v43  ;;  %v6465_v13 = vpack.c.bf16 %v1679_v2, %v1672_v59  ;;  %v5349_v44 = vpack.c.bf16 %v7814_v35, %v7813_v23  ;;  %v6518_v3 = vpack.c.bf16 %v7815_v16, %v1656_v45  ;;  %v7816_v45 = vand.u32 4294901760, %v6208_v48 }
  0x48   : > { %4603 = vmatmul.mubr.f32.gmra.mrb[14].mxu1 %v663_v8  ;;  %v2059_v8 = vld [vmem:[%s363_s21] sm:$0x1]  ;;  %s4067_s21 = scalar_lea.sflag [#allocation4], %s345_s25 }
  0x49   : > { %4773 = vmatprep.mubr.msk.f32.mxu1 %vm5996_vm1, %v7728_v24  ;;  %v2061_v63 = vsel %vm391_vm0, %v2059_v8, 0 }
  0x4a   : > { %4635 = vmatmul.mubr.f32.gmra.mrb[14].mxu0 %v6366_v47 }
  0x4b   : > { %4645 = vmatprep.mubr.f32.mxu0 %v6208_v48 }
  0x4c   : > { %4774 = vmatmul.mubr.f32.vlgmr.msra.gmra.mrb[16].mxu1 %v1647_v20 }
  0x4d   : > { %5373 = vmatpush3.bf16.msra.mxu1 %v6460_v26  ;;  %4784 = vmatprep.mubr.msk.f32.mxu1 %vm5996_vm1, %v7728_v24 }
  0x4e   : > { %4646 = vmatmul.mubr.f32.vlgmr.msra.gmra.mrb[0].mxu0 %v6217_v54  ;;  %5374 = vmatprep.subr.bf16.mxu1 %v7743_v57 }
  0x4f   : > { %5344 = vmatpush3.bf16.msra.mxu0 %v6136_v14  ;;  %4648 = vmatprep.mubr.f32.mxu0 %v6225_v60 }
  0x50   : > { %5346 = vmatprep.subr.bf16.mxu0 %v6149_v19 }
  0x51   : > { %5376 = vmatpush3.bf16.msra.mxu1 %v6465_v13 }
  0x52   : > { %4649 = vmatmul.mubr.f32.gmra.mrb[2].mxu0 %v6232_v0  ;;  %5377 = vmatprep.subr.bf16.mxu1 %v7743_v57  ;;  %v7822_v0 = vand.u32 4294901760, %v6264_v40 }
  0x53   : > { %4651 = vmatprep.mubr.f32.mxu0 %v6241_v5  ;;  %5348 = vmatpush3.bf16.msra.mxu0 %v6149_v19 }
  0x54   : > { %4785 = vmatmul.mubr.f32.vlgmr.msra.gmra.mrb[16].mxu1 %v6395_v4  ;;  %5350 = vmatprep.subr.bf16.mxu0 %v5349_v44 }
  0x55   : > { %5379 = vmatpush3.bf16.msra.mxu1 %v6481_v18  ;;  %4795 = vmatprep.mubr.msk.f32.mxu1 %vm5996_vm1, %v7728_v24 }
  0x56   : > { %4652 = vmatmul.mubr.f32.gmra.mrb[4].mxu0 %v6258_v36  ;;  %5380 = vmatprep.subr.bf16.mxu1 %v7743_v57 }
  0x57   : > { %4654 = vmatprep.mubr.f32.mxu0 %v6264_v40  ;;  %v7826_v40 = vand.u32 4294901760, %v6318_v58 }
  0x59   : > { %5382 = vmatpush3.bf16.msra.mxu1 %v6491_v15 }
  0x5a   : > { %4655 = vmatmul.mubr.f32.gmra.mrb[6].mxu0 %v6278_v53  ;;  %5383 = vmatprep.subr.bf16.mxu1 %v7743_v57 }
  0x5b   : > { %4657 = vmatprep.mubr.f32.mxu0 %v6296_v33 }
  0x5c   : > { %4796 = vmatmul.mubr.f32.vlgmr.msra.gmra.mrb[16].mxu1 %v6411_v38  ;;  %v6538_v38 = vand.u32 4294901760, %v2061_v63 }
  0x5d   : > { %5385 = vmatpush3.bf16.msra.mxu1 %v6158_v21  ;;  %4806 = vmatprep.mubr.msk.f32.mxu1 %vm5996_vm1, %v7728_v24 }
  0x5e   : > { %4658 = vmatmul.mubr.f32.gmra.mrb[8].mxu0 %v6313_v29  ;;  %5386 = vmatprep.subr.bf16.mxu1 %v7743_v57  ;;  %v2133_v9 = vsub.f32 %v2061_v63, %v6538_v38 }
  0x5f   : > { %4660 = vmatprep.mubr.f32.mxu0 %v6318_v58  ;;  %v7830_v58 = vand.u32 4294901760, %v6364_v28 }
  0x60   : > { %v2134_v48 = vand.u32 4294901760, %v2133_v9 }
  0x61   : > { %5388 = vmatpush3.bf16.msra.mxu1 %v6377_v7 }
  0x62   : > { %4661 = vmatmul.mubr.f32.gmra.mrb[10].mxu0 %v6337_v37  ;;  %5389 = vmatprep.subr.bf16.mxu1 %v7743_v57  ;;  %v2135_v54 = vsub.f32 %v2133_v9, %v2134_v48 }
  0x63   : > { %4663 = vmatprep.mubr.f32.mxu0 %v6340_v50 }
  0x64   : > { %4807 = vmatmul.mubr.f32.vlgmr.msra.gmra.mrb[16].mxu1 %v1645_v10  ;;  %v7818_v10 = vand.u32 4294901760, %v6225_v60  ;;  %v7821_v60 = vand.u32 4294901760, %v6258_v36  ;;  %v2136_v5 = vand.u32 4294901760, %v2135_v54  ;;  %v7825_v36 = vand.u32 4294901760, %v6313_v29 }
  0x65   : > { %5391 = vmatpush3.bf16.msra.mxu1 %v6518_v3  ;;  %4817 = vmatprep.mubr.msk.f32.mxu1 %vm5996_vm1, %v7728_v24  ;;  %v7829_v29 = vand.u32 4294901760, %v6351_v31 }
  0x66   : > { %4664 = vmatmul.mubr.f32.gmra.mrb[12].mxu0 %v6351_v31  ;;  %5392 = vmatprep.subr.bf16.mxu1 %v7743_v57  ;;  %v2548_v31 = vlaneseq }
  0x67   : > { %4666 = vmatprep.mubr.f32.mxu0 %v6364_v28 }
  0x68   : > { %v2549_v11 = vshrl.u32 %v2548_v31, 7 }
  0x69   : > { %5394 = vmatpush3.bf16.msra.mxu1 %v6530_v30 }
  0x6a   : > { %4667 = vmatmul.mubr.f32.gmra.mrb[14].mxu0 %v6384_v22  ;;  %5395 = vmatprep.subr.bf16.mxu1 %v7743_v57  ;;  %v6699_v20 = vsub.s32 0, %v2549_v11 }
  0x6b   : > { %4677 = vmatprep.mubr.f32.mxu0 %v7816_v45 }
  0x6c   : > { %4818 = vmatmul.mubr.f32.vlgmr.msra.gmra.mrb[16].mxu1 %v6395_v4  ;;  %7834 = vst [vmem:[#allocation8_spill] sm:$0xff] %v6699_v20 }
  0x6d   : > { %5397 = vmatpush3.bf16.msra.mxu1 %v6158_v21  ;;  %4828 = vmatprep.mubr.msk.f32.mxu1 %vm5996_vm1, %v7728_v24 }
  0x6e   : > { %4678 = vmatmul.mubr.f32.vlgmr.msra.gmra.mrb[0].mxu0 %v7817_v12  ;;  %5398 = vmatprep.subr.bf16.mxu1 %v7743_v57 }
  0x6f   : > { %5352 = vmatpush3.bf16.msra.mxu0 %v5349_v44  ;;  %4680 = vmatprep.mubr.f32.mxu0 %v7818_v10  ;;  %v6713_v44 = vld [vmem:[%s7704_s5] ss:$0 sm:$0xff] }
  0x70   : > { %5354 = vmatprep.subr.bf16.mxu0 %v6444_v52 }
  0x71   : > { %5400 = vmatpush3.bf16.msra.mxu1 %v6377_v7 }
  0x72   : > { %4681 = vmatmul.mubr.f32.gmra.mrb[2].mxu0 %v7819_v25  ;;  %5401 = vmatprep.subr.bf16.mxu1 %v7743_v57 }
  0x73   : > { %4683 = vmatprep.mubr.f32.mxu0 %v7820_v32  ;;  %5356 = vmatpush3.bf16.msra.mxu0 %v6444_v52  ;;  %v7824_v52 = vand.u32 4294901760, %v6296_v33  ;;  %v7828_v33 = vand.u32 4294901760, %v6340_v50 }
  0x74   : > { %4829 = vmatmul.mubr.f32.vlgmr.msra.gmra.mrb[16].mxu1 %v6395_v4  ;;  %5358 = vmatprep.subr.bf16.mxu0 %v6136_v14  ;;  %v7823_v4 = vand.u32 4294901760, %v6278_v53  ;;  %v7827_v53 = vand.u32 4294901760, %v6337_v37  ;;  %v7831_v37 = vand.u32 4294901760, %v6384_v22 }
  0x75   : > { %5403 = vmatpush3.bf16.msra.mxu1 %v6158_v21  ;;  %4839 = vmatprep.mubr.msk.f32.mxu1 %vm5996_vm1, %v7728_v24 }
  0x76   : > { %4684 = vmatmul.mubr.f32.gmra.mrb[4].mxu0 %v7821_v60  ;;  %5404 = vmatprep.subr.bf16.mxu1 %v7743_v57 }
  0x77   : > { %4686 = vmatprep.mubr.f32.mxu0 %v7822_v0 }
  0x79   : > { %5406 = vmatpush3.bf16.msra.mxu1 %v6377_v7 }
  0x7a   : > { %4687 = vmatmul.mubr.f32.gmra.mrb[6].mxu0 %v7823_v4  ;;  %5407 = vmatprep.subr.bf16.mxu1 %v7743_v57 }
  0x7b   : > { %4689 = vmatprep.mubr.f32.mxu0 %v7824_v52 }
  0x7c   : > { %4840 = vmatmul.mubr.f32.vlgmr.msra.gmra.mrb[18].mxu1 %v2136_v5 }
  0x7d   : > { %5409 = vmatpush3.bf16.msra.mxu1 %v6460_v26  ;;  %4850 = vmatprep.mubr.msk.f32.mxu1 %vm5996_vm1, %v7728_v24 }
  0x7e   : > { %4690 = vmatmul.mubr.f32.gmra.mrb[8].mxu0 %v7825_v36  ;;  %5410 = vmatprep.subr.bf16.mxu1 %v7743_v57 }
  0x7f   : > { %4692 = vmatprep.mubr.f32.mxu0 %v7826_v40 }
  0x81   : > { %5412 = vmatpush3.bf16.msra.mxu1 %v6465_v13 }
  0x82   : > { %4693 = vmatmul.mubr.f32.gmra.mrb[10].mxu0 %v7827_v53  ;;  %5413 = vmatprep.subr.bf16.mxu1 %v7743_v57 }
  0x83   : > { %4695 = vmatprep.mubr.f32.mxu0 %v7828_v33 }
  0x84   : > { %4851 = vmatmul.mubr.f32.vlgmr.msra.gmra.mrb[18].mxu1 %v6538_v38 }
  0x85   : > { %5415 = vmatpush3.bf16.msra.mxu1 %v6481_v18  ;;  %4861 = vmatprep.mubr.msk.f32.mxu1 %vm5996_vm1, %v7728_v24 }
  0x86   : > { %4696 = vmatmul.mubr.f32.gmra.mrb[12].mxu0 %v7829_v29  ;;  %5416 = vmatprep.subr.bf16.mxu1 %v7743_v57 }
  0x87   : > { %4698 = vmatprep.mubr.f32.mxu0 %v7830_v58 }
  0x89   : > { %5418 = vmatpush3.bf16.msra.mxu1 %v6491_v15 }
  0x8a   : > { %4699 = vmatmul.mubr.f32.gmra.mrb[14].mxu0 %v7831_v37  ;;  %5419 = vmatprep.subr.bf16.mxu1 %v7743_v57 }
  0x8b   : > { %4709 = vmatprep.mubr.f32.mxu0 %v6199_v39 }
  0x8c   : > { %4862 = vmatmul.mubr.f32.vlgmr.msra.gmra.mrb[18].mxu1 %v2133_v9 }
  0x8d   : > { %5421 = vmatpush3.bf16.msra.mxu1 %v6158_v21  ;;  %4872 = vmatprep.mubr.msk.f32.mxu1 %vm5996_vm1, %v7728_v24 }
  0x8e   : > { %4710 = vmatmul.mubr.f32.vlgmr.msra.gmra.mrb[0].mxu0 %v6204_v46  ;;  %5422 = vmatprep.subr.bf16.mxu1 %v7743_v57 }
  0x8f   : > { %5360 = vmatpush3.bf16.msra.mxu0 %v6136_v14  ;;  %4712 = vmatprep.mubr.f32.mxu0 %v6211_v49 }
  0x90   : > { %5362 = vmatprep.subr.bf16.mxu0 %v6149_v19 }
  0x91   : > { %5424 = vmatpush3.bf16.msra.mxu1 %v6377_v7 }
  0x92   : > { %4713 = vmatmul.mubr.f32.gmra.mrb[2].mxu0 %v6219_v55  ;;  %5425 = vmatprep.subr.bf16.mxu1 %v7743_v57 }
  0x93   : > { %4715 = vmatprep.mubr.f32.mxu0 %v6227_v61  ;;  %5364 = vmatpush3.bf16.msra.mxu0 %v6149_v19 }
  0x94   : > { %4873 = vmatmul.mubr.f32.vlgmr.msra.gmra.mrb[18].mxu1 %v2134_v48  ;;  %5581 = vmatprep.subr.bf16.mxu0 %v7743_v57 }
  0x95   : > { %5427 = vmatpush3.bf16.msra.mxu1 %v6518_v3  ;;  %4883 = vmatprep.mubr.msk.f32.mxu1 %vm5996_vm1, %v7728_v24 }
  0x96   : > { %4716 = vmatmul.mubr.f32.gmra.mrb[4].mxu0 %v6243_v6  ;;  %5428 = vmatprep.subr.bf16.mxu1 %v7743_v57 }
  0x97   : > { %4718 = vmatprep.mubr.f32.mxu0 %v6249_v27 }
  0x99   : > { %5430 = vmatpush3.bf16.msra.mxu1 %v6530_v30 }
  0x9a   : > { %4719 = vmatmul.mubr.f32.gmra.mrb[6].mxu0 %v6266_v41  ;;  %5431 = vmatprep.subr.bf16.mxu1 %v7743_v57 }
  0x9b   : > { %4721 = vmatprep.mubr.f32.mxu0 %v6280_v56 }
  0x9c   : > { %4884 = vmatmul.mubr.f32.vlgmr.msra.gmra.mrb[18].mxu1 %v6538_v38 }
  0x9d   : > { %5433 = vmatpush3.bf16.msra.mxu1 %v6158_v21  ;;  %4894 = vmatprep.mubr.msk.f32.mxu1 %vm5996_vm1, %v7728_v24 }
  0x9e   : > { %4722 = vmatmul.mubr.f32.gmra.mrb[8].mxu0 %v6298_v34  ;;  %5434 = vmatprep.subr.bf16.mxu1 %v7743_v57 }
  0x9f   : > { %4724 = vmatprep.mubr.f32.mxu0 %v6304_v42 }
  0xa1   : > { %5436 = vmatpush3.bf16.msra.mxu1 %v6377_v7 }
  0xa2   : > { %4725 = vmatmul.mubr.f32.gmra.mrb[10].mxu0 %v6320_v51  ;;  %5437 = vmatprep.subr.bf16.mxu1 %v7743_v57 }
  0xa3   : > { %4727 = vmatprep.mubr.f32.mxu0 %v6322_v62 }
  0xa4   : > { %4895 = vmatmul.mubr.f32.vlgmr.msra.gmra.mrb[18].mxu1 %v6538_v38 }
  0xa5   : > { %4929 = vmatprep.mubr.msk.f32.mxu1 %vm5996_vm1, %v7728_v24 }
  0xa6   : > { %4728 = vmatmul.mubr.f32.gmra.mrb[12].mxu0 %v6330_v1 }
  0xa7   : > { %4730 = vmatprep.mubr.f32.mxu0 %v6353_v43 }
  0xaa   : > { %4731 = vmatmul.mubr.f32.gmra.mrb[14].mxu0 %v6366_v47 }
  0xab   : > { %4741 = vmatprep.mubr.f32.mxu0 %v6199_v39 }
  0xae   : > { %4742 = vmatmul.mubr.f32.vlgmr.msra.gmra.mrb[0].mxu0 %v6204_v46 }
  0xaf   : > { %4744 = vmatprep.mubr.f32.mxu0 %v6211_v49 }
  0xb2   : > { %4745 = vmatmul.mubr.f32.gmra.mrb[2].mxu0 %v6219_v55 }
  0xb3   : > { %4747 = vmatprep.mubr.f32.mxu0 %v6227_v61 }
  0xb6   : > { %4748 = vmatmul.mubr.f32.gmra.mrb[4].mxu0 %v6243_v6 }
  0xb7   : > { %4750 = vmatprep.mubr.f32.mxu0 %v6249_v27 }
  0xba   : > { %4751 = vmatmul.mubr.f32.gmra.mrb[6].mxu0 %v6266_v41 }
  0xbb   : > { %4753 = vmatprep.mubr.f32.mxu0 %v6280_v56 }
  0xbe   : > { %4754 = vmatmul.mubr.f32.gmra.mrb[8].mxu0 %v6298_v34 }
  0xbf   : > { %4756 = vmatprep.mubr.f32.mxu0 %v6304_v42 }
  0xc2   : > { %4757 = vmatmul.mubr.f32.gmra.mrb[10].mxu0 %v6320_v51 }
  0xc3   : > { %4759 = vmatprep.mubr.f32.mxu0 %v6322_v62 }
  0xc6   : > { %4760 = vmatmul.mubr.f32.gmra.mrb[12].mxu0 %v6330_v1  ;;  %v389_v1 = vld [vmem:[%s7705_s6] sm:$0x1] }
  0xc7   : > { %4762 = vmatprep.mubr.f32.mxu0 %v6353_v43  ;;  %v2668_v50 = vsel %vm391_vm0, %v389_v1, 0 }
  0xc8   : > { %v6694_v28 = vand.u32 4294901760, %v2668_v50 }
  0xca   : > { %4763 = vmatmul.mubr.f32.gmra.mrb[14].mxu0 %v6366_v47  ;;  %7832 = vst [vmem:[#allocation6_spill] sm:$0xff] %v6694_v28  ;;  %v6697_v17 = vsub.f32 %v2668_v50, %v6694_v28 }
  0xcb   : > { %5139 = vmatprep.mubr.msk.f32.mxu0 %vm5996_vm1, %v7728_v24 }
  0xcc   : > { %7833 = vst [vmem:[#allocation7_spill] sm:$0xff] %v6697_v17  ;;  %v6702_v26 = vand.u32 4294901760, %v6697_v17 }
  0xce   : > { %7835 = vst [vmem:[#allocation9_spill] sm:$0xff] %v6702_v26  ;;  %v2802_v15 = vsub.f32 %v6697_v17, %v6702_v26 }
  0xd0   : > { %v6725_v32 = vand.u32 4294901760, %v2802_v15 }
  0xd2   : > { %7836 = vst [vmem:[#allocation10_spill] sm:$0xff] %v6725_v32 }
  0xff   : > { %v4583_v14 = vpop.f32.mrb[0].mxu1 }
 0x100   : > { %v515_v19 = vpop.f32.mrb[1].mxu1 }
 0x103   : > { %v4586_v21 = vpop.f32.mrb[2].mxu1 }
 0x104   : > { %v535_v22 = vpop.f32.mrb[3].mxu1 }
 0x107   : > { %v6666_v39 = vpop.f32.mrb[4].mxu1 }
 0x108   : > { %v6668_v46 = vpop.f32.mrb[5].mxu1 }
 0x10b   : > { %v6670_v49 = vpop.f32.mrb[6].mxu1 }
 0x10c   : > { %v6672_v55 = vpop.f32.mrb[7].mxu1 }
 0x10f   : > { %v6674_v61 = vpop.f32.mrb[8].mxu1 }
 0x110   : > { %v6676_v6 = vpop.f32.mrb[9].mxu1 }
 0x113   : > { %v6678_v27 = vpop.f32.mrb[10].mxu1 }
 0x114   : > { %v6680_v41 = vpop.f32.mrb[11].mxu1 }
 0x117   : > { %v6682_v47 = vpop.f32.mrb[12].mxu1 }
 0x118   : > { %v6684_v56 = vpop.f32.mrb[13].mxu1 }
 0x11b   : > { %v6686_v34 = vpop.f32.mrb[14].mxu1 }
 0x11c   : > { %v6688_v42 = vpop.f32.mrb[15].mxu1 }
 0x147   : > { %v2055_v51 = vpop.f32.mrb[16].mxu1 }
 0x148   : > { %v4830_v62 = vpop.f32.mrb[17].mxu1  ;;  %v6705_v2 = vrot.slane %v2055_v51, %v6699_v20 }
 0x177   : > { %v2544_v43 = vpop.f32.mrb[18].mxu1 }
 0x178   : > { %v4896_v7 = vpop.f32.mrb[19].mxu1  ;;  %v6708_v13 = vrot.slane %v2544_v43, %v6699_v20 }
 0x181   : > { %v4743_v59 = vpop.f32.mrb[0].mxu0 }
 0x182   : > { %v5725_v23 = vadd.f32 %v4743_v59, %v4583_v14  ;;  %v1476_v35 = vpop.f32.mrb[1].mxu0 }
 0x183   : > { %v5726_v18 = vadd.f32 %v1476_v35, %v515_v19 }
 0x184   : > { %v2553_v16 = vadd.f32 %v5725_v23, %v6705_v2  ;;  %v2611_v3 = vadd.f32 %v5725_v23, %v6708_v13 }
 0x185   : > { %v2552_v8 = vadd.f32 %v5726_v18, %v6705_v2  ;;  %v2610_v30 = vadd.f32 %v5726_v18, %v6708_v13  ;;  %v4746_v63 = vpop.f32.mrb[2].mxu0 }
 0x186   : > { %v2575_v38 = vadd.f32 %v6713_v44, %v2553_v16  ;;  %v2627_v45 = vadd.f32 %v6713_v44, %v2611_v3  ;;  %v5727_v9 = vadd.f32 %v4746_v63, %v4586_v21  ;;  %v1488_v12 = vpop.f32.mrb[3].mxu0 }
 0x187   : > { %v2574_v10 = vadd.f32 %v6713_v44, %v2552_v8  ;;  %v2626_v48 = vadd.f32 %v6713_v44, %v2610_v30  ;;  %v5728_v25 = vadd.f32 %v1488_v12, %v535_v22 }
 0x188   : > { %v2591_v54 = vmax.f32 %v2575_v38, 0.0  ;;  %v2643_v60 = vmax.f32 %v2627_v45, 0.0  ;;  %v2555_v0 = vadd.f32 %v5727_v9, %v6705_v2  ;;  %v2613_v5 = vadd.f32 %v5727_v9, %v6708_v13 }
 0x189   : > { %v2590_v4 = vmax.f32 %v2574_v10, 0.0  ;;  %v2642_v52 = vmax.f32 %v2626_v48, 0.0  ;;  %v2554_v36 = vadd.f32 %v5728_v25, %v6705_v2  ;;  %v2612_v40 = vadd.f32 %v5728_v25, %v6708_v13  ;;  %v4749_v53 = vpop.f32.mrb[4].mxu0 }
 0x18a   : > { %v6732_v33 = vsel %vm391_vm0, %v2591_v54, 0  ;;  %v6735_v29 = vsel %vm391_vm0, %v2643_v60, 0  ;;  %v2577_v58 = vadd.f32 %v6713_v44, %v2555_v0  ;;  %v2629_v37 = vadd.f32 %v6713_v44, %v2613_v5  ;;  %v1500_v14 = vpop.f32.mrb[5].mxu0 }
 0x18b   : > { %v2722_v19 = vand.u32 4294901760, %v6732_v33  ;;  %v3411_v21 = vand.u32 4294901760, %v6735_v29  ;;  %v6742_v22 = vsel %vm391_vm0, %v2590_v4, 0  ;;  %v6745_v51 = vsel %vm391_vm0, %v2642_v52, 0 }
 0x18c   : > { %v2719_v62 = vand.u32 4294901760, %v6742_v22  ;;  %v3408_v1 = vand.u32 4294901760, %v6745_v51  ;;  %v2593_v50 = vmax.f32 %v2577_v58, 0.0  ;;  %v2645_v31 = vmax.f32 %v2629_v37, 0.0 }
 0x18d   : > { %v6752_v43 = vsub.f32 %v6732_v33, %v2722_v19  ;;  %v6757_v7 = vsub.f32 %v6735_v29, %v3411_v21  ;;  %v2576_v11 = vadd.f32 %v6713_v44, %v2554_v36  ;;  %v2628_v59 = vadd.f32 %v6713_v44, %v2612_v40  ;;  %v4752_v23 = vpop.f32.mrb[6].mxu0 }
 0x18e   : > { %v6764_v35 = vsub.f32 %v6742_v22, %v2719_v62  ;;  %v6769_v18 = vsub.f32 %v6745_v51, %v3408_v1  ;;  %v6772_v15 = vsel %vm391_vm0, %v2593_v50, 0  ;;  %v6775_v16 = vsel %vm391_vm0, %v2645_v31, 0  ;;  %v1512_v3 = vpop.f32.mrb[7].mxu0 }
 0x18f   : > { %v7734_v8 = vand.u32 4294901760, %v6772_v15  ;;  %v7730_v30 = vand.u32 4294901760, %v6775_v16  ;;  %v2592_v63 = vmax.f32 %v2576_v11, 0.0  ;;  %v2644_v38 = vmax.f32 %v2628_v59, 0.0 }
 0x190   : > { %v5729_v45 = vadd.f32 %v4749_v53, %v6666_v39  ;;  %v5730_v9 = vadd.f32 %v1500_v14, %v6668_v46  ;;  %v5731_v12 = vadd.f32 %v4752_v23, %v6670_v49  ;;  %v5732_v10 = vadd.f32 %v1512_v3, %v6672_v55 }
 0x191   : > { %v6786_v48 = vsub.f32 %v6772_v15, %v7734_v8  ;;  %v6791_v25 = vsub.f32 %v6775_v16, %v7730_v30  ;;  %v6794_v54 = vsel %vm391_vm0, %v2592_v63, 0  ;;  %v6797_v39 = vsel %vm391_vm0, %v2644_v38, 0  ;;  %v4755_v46 = vpop.f32.mrb[8].mxu0 }
 0x192   : > { %v7741_v49 = vand.u32 4294901760, %v6794_v54  ;;  %v7732_v55 = vand.u32 4294901760, %v6797_v39  ;;  %v2557_v60 = vadd.f32 %v5729_v45, %v6705_v2  ;;  %v2615_v0 = vadd.f32 %v5729_v45, %v6708_v13  ;;  %v1524_v5 = vpop.f32.mrb[9].mxu0 }
 0x193   : > { %v2556_v4 = vadd.f32 %v5730_v9, %v6705_v2  ;;  %v2614_v52 = vadd.f32 %v5730_v9, %v6708_v13  ;;  %v2559_v36 = vadd.f32 %v5731_v12, %v6705_v2  ;;  %v2617_v40 = vadd.f32 %v5731_v12, %v6708_v13 }
 0x194   : > { %v6810_v53 = vsub.f32 %v6794_v54, %v7741_v49  ;;  %v6815_v58 = vsub.f32 %v6797_v39, %v7732_v55  ;;  %v2579_v37 = vadd.f32 %v6713_v44, %v2557_v60  ;;  %v2631_v14 = vadd.f32 %v6713_v44, %v2615_v0 }
 0x195   : > { %v2578_v50 = vadd.f32 %v6713_v44, %v2556_v4  ;;  %v2630_v31 = vadd.f32 %v6713_v44, %v2614_v52  ;;  %v2581_v11 = vadd.f32 %v6713_v44, %v2559_v36  ;;  %v2633_v59 = vadd.f32 %v6713_v44, %v2617_v40  ;;  %v4758_v23 = vpop.f32.mrb[10].mxu0 }
 0x196   : > { %v2595_v3 = vmax.f32 %v2579_v37, 0.0  ;;  %v2647_v63 = vmax.f32 %v2631_v14, 0.0  ;;  %v2558_v38 = vadd.f32 %v5732_v10, %v6705_v2  ;;  %v2616_v45 = vadd.f32 %v5732_v10, %v6708_v13  ;;  %v1536_v9 = vpop.f32.mrb[11].mxu0 }
 0x197   : > { %v2594_v12 = vmax.f32 %v2578_v50, 0.0  ;;  %v2646_v60 = vmax.f32 %v2630_v31, 0.0  ;;  %v2597_v24 = vmax.f32 %v2581_v11, 0.0  ;;  %v2649_v0 = vmax.f32 %v2633_v59, 0.0 }
 0x198   : > { %v6826_v4 = vsel %vm391_vm0, %v2595_v3, 0  ;;  %v6829_v52 = vsel %vm391_vm0, %v2647_v63, 0  ;;  %v2580_v36 = vadd.f32 %v6713_v44, %v2558_v38  ;;  %v2632_v40 = vadd.f32 %v6713_v44, %v2616_v45 }
 0x199   : > { %v7731_v37 = vand.u32 4294901760, %v6826_v4  ;;  %v7733_v14 = vand.u32 4294901760, %v6829_v52  ;;  %v6836_v10 = vsel %vm391_vm0, %v2594_v12, 0  ;;  %v6839_v50 = vsel %vm391_vm0, %v2646_v60, 0  ;;  %v6841_v31 = vpop.f32.mrb[12].mxu0 }
 0x19a   : > { %v7735_v11 = vand.u32 4294901760, %v6836_v10  ;;  %v7740_v59 = vand.u32 4294901760, %v6839_v50  ;;  %v6846_v3 = vsel %vm391_vm0, %v2597_v24, 0  ;;  %v6849_v63 = vsel %vm391_vm0, %v2649_v0, 0  ;;  %v6851_v38 = vpop.f32.mrb[13].mxu0 }
 0x19b   : > { %v6856_v45 = vsub.f32 %v6826_v4, %v7731_v37  ;;  %v6861_v12 = vsub.f32 %v6829_v52, %v7733_v14  ;;  %v7736_v60 = vand.u32 4294901760, %v6846_v3  ;;  %v7737_v24 = vand.u32 4294901760, %v6849_v63 }
 0x19c   : > { %v6868_v0 = vsub.f32 %v6836_v10, %v7735_v11  ;;  %v6873_v30 = vsub.f32 %v6839_v50, %v7740_v59  ;;  %v2596_v37 = vmax.f32 %v2580_v36, 0.0  ;;  %v2648_v55 = vmax.f32 %v2632_v40, 0.0 }
 0x19d   : > { %v6878_v14 = vsub.f32 %v6846_v3, %v7736_v60  ;;  %v6883_v8 = vsub.f32 %v6849_v63, %v7737_v24  ;;  %v6889_v11 = vpack.c.bf16 %v2722_v19, %v2719_v62  ;;  %v6895_v36 = vpack.c.bf16 %v3411_v21, %v3408_v1  ;;  %v6897_v40 = vpop.f32.mrb[14].mxu0 }
 0x19e   : > { %v6900_v60 = vsel %vm391_vm0, %v2596_v37, 0  ;;  %v6903_v24 = vsel %vm391_vm0, %v2648_v55, 0  ;;  %v5733_v22 = vadd.f32 %v4755_v46, %v6674_v61  ;;  %v5734_v33 = vadd.f32 %v1524_v5, %v6676_v6  ;;  %v6907_v19 = vpop.f32.mrb[15].mxu0 }
 0x19f   : > { %7837 = vst [vmem:[#allocation11_spill] sm:$0xff] %v6889_v11  ;;  %7838 = vst [vmem:[#allocation12_spill] sm:$0xff] %v6895_v36  ;;  %v7738_v51 = vand.u32 4294901760, %v6900_v60  ;;  %v7739_v29 = vand.u32 4294901760, %v6903_v24  ;;  %5439 = vmatpush3.bf16.xpose.msra.mxu1 %v6889_v11  ;;  %5583 = vmatpush3.bf16.xpose.msra.mxu0 %v6895_v36  ;;  %v5735_v21 = vadd.f32 %v4758_v23, %v6678_v27  ;;  %v7840_v36 = vand.u32 4294901760, %v6772_v15 }
 0x1a0   : > { %v5736_v62 = vadd.f32 %v1536_v9, %v6680_v41  ;;  %v2561_v1 = vadd.f32 %v5733_v22, %v6705_v2  ;;  %v2619_v61 = vadd.f32 %v5733_v22, %v6708_v13  ;;  %v2560_v6 = vadd.f32 %v5734_v33, %v6705_v2  ;;  %5440 = vmatprep.subr.bf16.mxu1 %v7743_v57 }
 0x1a1   : > { %v2618_v46 = vadd.f32 %v5734_v33, %v6708_v13  ;;  %v6923_v55 = vsub.f32 %v6900_v60, %v7738_v51  ;;  %v6928_v27 = vsub.f32 %v6903_v24, %v7739_v29  ;;  %v2563_v41 = vadd.f32 %v5735_v21, %v6705_v2  ;;  %5584 = vmatprep.subr.bf16.mxu0 %v7743_v57 }
 0x1a2   : > { %v2621_v5 = vadd.f32 %v5735_v21, %v6708_v13  ;;  %v2583_v23 = vadd.f32 %v6713_v44, %v2561_v1  ;;  %v2635_v9 = vadd.f32 %v6713_v44, %v2619_v61  ;;  %v2582_v37 = vadd.f32 %v6713_v44, %v2560_v6 }
 0x1a3   : > { %v2634_v22 = vadd.f32 %v6713_v44, %v2618_v46  ;;  %v2585_v33 = vadd.f32 %v6713_v44, %v2563_v41  ;;  %v2562_v29 = vadd.f32 %v5736_v62, %v6705_v2  ;;  %v2620_v59 = vadd.f32 %v5736_v62, %v6708_v13 }
 0x1a4   : > { %v2637_v51 = vadd.f32 %v6713_v44, %v2621_v5  ;;  %v2599_v49 = vmax.f32 %v2583_v23, 0.0  ;;  %v2651_v21 = vmax.f32 %v2635_v9, 0.0  ;;  %v2598_v20 = vmax.f32 %v2582_v37, 0.0 }
 0x1a5   : > { %v2650_v57 = vmax.f32 %v2634_v22, 0.0  ;;  %v2601_v26 = vmax.f32 %v2585_v33, 0.0  ;;  %v2584_v61 = vadd.f32 %v6713_v44, %v2562_v29  ;;  %v2636_v6 = vadd.f32 %v6713_v44, %v2620_v59 }
 0x1a6   : > { %v2653_v1 = vmax.f32 %v2637_v51, 0.0  ;;  %v6944_v46 = vsel %vm391_vm0, %v2599_v49, 0  ;;  %v6947_v41 = vsel %vm391_vm0, %v2651_v21, 0  ;;  %v6950_v5 = vsel %vm391_vm0, %v2598_v20, 0 }
 0x1a7   : > { %v6953_v62 = vsel %vm391_vm0, %v2650_v57, 0  ;;  %v7748_v23 = vand.u32 4294901760, %v6944_v46  ;;  %v7747_v51 = vand.u32 4294901760, %v6947_v41  ;;  %v7749_v29 = vand.u32 4294901760, %v6950_v5 }
 0x1a8   : > { %v7752_v59 = vand.u32 4294901760, %v6953_v62  ;;  %v6960_v49 = vsel %vm391_vm0, %v2601_v26, 0  ;;  %v6963_v9 = vsel %vm391_vm0, %v2653_v1, 0  ;;  %v2600_v37 = vmax.f32 %v2584_v61, 0.0 }
 0x1a9   : > { %v2652_v20 = vmax.f32 %v2636_v6, 0.0  ;;  %v6968_v57 = vsub.f32 %v6944_v46, %v7748_v23  ;;  %v6973_v22 = vsub.f32 %v6947_v41, %v7747_v51  ;;  %v6978_v26 = vsub.f32 %v6950_v5, %v7749_v29 }
 0x1aa   : > { %v6983_v33 = vsub.f32 %v6953_v62, %v7752_v59  ;;  %v6988_v61 = vsel %vm391_vm0, %v2600_v37, 0  ;;  %v7839_v29 = vand.u32 4294901760, %v6794_v54  ;;  %v7842_v21 = vand.u32 4294901760, %v6797_v39 }
 0x1ab   : > { %v6991_v6 = vsel %vm391_vm0, %v2652_v20, 0  ;;  %v7843_v1 = vand.u32 4294901760, %v6775_v16  ;;  %v7845_v37 = vand.u32 4294901760, %v6960_v49  ;;  %v7846_v51 = vand.u32 4294901760, %v6963_v9 }
 0x1ac   : > { %v6999_v59 = vpack.c.bf16 %v7840_v36, %v7839_v29  ;;  %v5737_v15 = vadd.f32 %v6841_v31, %v6682_v47  ;;  %v5738_v54 = vadd.f32 %v6851_v38, %v6684_v56  ;;  %v7847_v16 = vand.u32 4294901760, %v6988_v61 }
 0x1ad   : > { %v7005_v11 = vpack.c.bf16 %v7843_v1, %v7842_v21  ;;  %v7010_v20 = vsub.f32 %v6960_v49, %v7845_v37  ;;  %v7015_v23 = vsub.f32 %v6963_v9, %v7846_v51  ;;  %v7848_v36 = vand.u32 4294901760, %v6991_v6 }
 0x1ae   : > { %7841 = vst [vmem:[#allocation13_spill] sm:$0xff] %v6999_v59  ;;  %v7024_v39 = vsub.f32 %v6988_v61, %v7847_v16  ;;  %5442 = vmatpush3.bf16.xpose.msra.mxu1 %v6999_v59  ;;  %v5739_v47 = vadd.f32 %v6897_v40, %v6686_v34  ;;  %v2565_v56 = vadd.f32 %v5737_v15, %v6705_v2  ;;  %v7849_v1 = vmov 0.0|0.0  }
 0x1af   : > { %7844 = vst [vmem:[#allocation14_spill] sm:$0xff] %v7005_v11  ;;  %v7029_v29 = vsub.f32 %v6991_v6, %v7848_v36  ;;  %5586 = vmatpush3.bf16.xpose.msra.mxu0 %v7005_v11  ;;  %v2623_v38 = vadd.f32 %v5737_v15, %v6708_v13  ;;  %v2564_v51 = vadd.f32 %v5738_v54, %v6705_v2  ;;  %v7850_v34 = vand.u32 4294901760, %v6836_v10 }
 0x1b0   : > { %v2622_v21 = vadd.f32 %v5738_v54, %v6708_v13  ;;  %5443 = vmatprep.subr.bf16.mxu1 %v7849_v1  ;;  %v2567_v37 = vadd.f32 %v5739_v47, %v6705_v2  ;;  %v2625_v16 = vadd.f32 %v5739_v47, %v6708_v13  ;;  %v5740_v36 = vadd.f32 %v6907_v19, %v6688_v42 }
 0x1b1   : > { %5587 = vmatprep.subr.bf16.mxu0 %v7849_v1  ;;  %v7851_v40 = vand.u32 4294901760, %v6826_v4  ;;  %v2587_v31 = vadd.f32 %v6713_v44, %v2565_v56  ;;  %v2639_v54 = vadd.f32 %v6713_v44, %v2623_v38  ;;  %v2586_v11 = vadd.f32 %v6713_v44, %v2564_v51 }
 0x1b2   : > { %v2638_v59 = vadd.f32 %v6713_v44, %v2622_v21  ;;  %v2589_v47 = vadd.f32 %v6713_v44, %v2567_v37  ;;  %v2641_v42 = vadd.f32 %v6713_v44, %v2625_v16  ;;  %v2566_v19 = vadd.f32 %v5740_v36, %v6705_v2 }
 0x1b3   : > { %v7050_v15 = vpack.c.bf16 %v7851_v40, %v7850_v34  ;;  %v2624_v10 = vadd.f32 %v5740_v36, %v6708_v13  ;;  %v2603_v17 = vmax.f32 %v2587_v31, 0.0  ;;  %v2655_v4 = vmax.f32 %v2639_v54, 0.0 }
 0x1b4   : > { %v2602_v34 = vmax.f32 %v2586_v11, 0.0  ;;  %v2654_v40 = vmax.f32 %v2638_v59, 0.0  ;;  %v2605_v28 = vmax.f32 %v2589_v47, 0.0  ;;  %v2657_v56 = vmax.f32 %v2641_v42, 0.0 }
 0x1b5   : > { %7852 = vst [vmem:[#allocation15_spill] sm:$0xff] %v7050_v15  ;;  %v2588_v38 = vadd.f32 %v6713_v44, %v2566_v19  ;;  %v2640_v51 = vadd.f32 %v6713_v44, %v2624_v10  ;;  %v2710_v21 = vsel %vm391_vm0, %v2603_v17, 0  ;;  %v3399_v37 = vsel %vm391_vm0, %v2655_v4, 0 }
 0x1b6   : > { %v2707_v16 = vsel %vm391_vm0, %v2602_v34, 0  ;;  %v3396_v2 = vsel %vm391_vm0, %v2654_v40, 0  ;;  %v2758_v32 = vand.u32 4294901760, %v2710_v21  ;;  %v3447_v13 = vand.u32 4294901760, %v3399_v37  ;;  %5445 = vmatpush3.bf16.xpose.msra.mxu1 %v7050_v15 }
 0x1b7   : > { %v2755_v31 = vand.u32 4294901760, %v2707_v16  ;;  %v3444_v36 = vand.u32 4294901760, %v3396_v2  ;;  %v2716_v11 = vsel %vm391_vm0, %v2605_v28, 0  ;;  %v3405_v59 = vsel %vm391_vm0, %v2657_v56, 0  ;;  %5446 = vmatprep.subr.bf16.mxu1 %v7849_v1 }
 0x1b8   : > { %v2604_v54 = vmax.f32 %v2588_v38, 0.0  ;;  %v2656_v44 = vmax.f32 %v2640_v51, 0.0  ;;  %v7070_v17 = vsub.f32 %v2710_v21, %v2758_v32  ;;  %v7072_v47 = vsub.f32 %v3399_v37, %v3447_v13 }
 0x1b9   : > { %v7074_v42 = vsub.f32 %v2707_v16, %v2755_v31  ;;  %v7076_v19 = vsub.f32 %v3396_v2, %v3444_v36  ;;  %v2764_v10 = vand.u32 4294901760, %v2716_v11  ;;  %v3453_v4 = vand.u32 4294901760, %v3405_v59 }
 0x1ba   : > { %7853 = vst [vmem:[#allocation16_spill] sm:$0xff] %v7072_v47  ;;  %v2713_v34 = vsel %vm391_vm0, %v2604_v54, 0  ;;  %v3402_v28 = vsel %vm391_vm0, %v2656_v44, 0  ;;  %v7855_v38 = vand.u32 4294901760, %v6839_v50  ;;  %v7856_v51 = vand.u32 4294901760, %v6829_v52 }
 0x1bb   : > { %7854 = vst [vmem:[#allocation17_spill] sm:$0xff] %v7076_v19  ;;  %v2761_v40 = vand.u32 4294901760, %v2713_v34  ;;  %v3450_v56 = vand.u32 4294901760, %v3402_v28  ;;  %v7858_v37 = vand.u32 4294901760, %v6900_v60  ;;  %v7859_v16 = vand.u32 4294901760, %v6846_v3 }
 0x1bc   : > { %v7084_v21 = vpack.c.bf16 %v7856_v51, %v7855_v38  ;;  %v7092_v15 = vsub.f32 %v2716_v11, %v2764_v10  ;;  %v7094_v47 = vsub.f32 %v3405_v59, %v3453_v4  ;;  %v7861_v54 = vand.u32 4294901760, %v6903_v24 }
 0x1bd   : > { %v7090_v2 = vpack.c.bf16 %v7859_v16, %v7858_v37  ;;  %v7862_v44 = vand.u32 4294901760, %v6849_v63  ;;  %v7864_v52 = vand.u32 4294901760, %v6950_v5  ;;  %v7865_v50 = vand.u32 4294901760, %v6944_v46 }
 0x1be   : > { %7857 = vst [vmem:[#allocation18_spill] sm:$0xff] %v7084_v21  ;;  %v7108_v60 = vsub.f32 %v2713_v34, %v2761_v40  ;;  %v7110_v3 = vsub.f32 %v3402_v28, %v3450_v56  ;;  %5589 = vmatpush3.bf16.xpose.msra.mxu0 %v7084_v21  ;;  %v7867_v11 = vand.u32 4294901760, %v6953_v62  ;;  %v7868_v24 = vand.u32 4294901760, %v6947_v41 }
 0x1bf   : > { %7860 = vst [vmem:[#allocation19_spill] sm:$0xff] %v7090_v2  ;;  %v7100_v19 = vpack.c.bf16 %v7862_v44, %v7861_v54  ;;  %v7106_v38 = vpack.c.bf16 %v7865_v50, %v7864_v52  ;;  %v7870_v63 = vand.u32 4294901760, %v6988_v61  ;;  %v7871_v5 = vand.u32 4294901760, %v6960_v49  ;;  %5590 = vmatprep.subr.bf16.mxu0 %v7849_v1  ;;  %5448 = vmatpush3.bf16.xpose.msra.mxu1 %v7090_v2 }
 0x1c0   : > { %v7117_v59 = vpack.c.bf16 %v7868_v24, %v7867_v11  ;;  %v7873_v46 = vand.u32 4294901760, %v6991_v6  ;;  %v7874_v34 = vand.u32 4294901760, %v6963_v9  ;;  %v7132_v37 = vpack.c.bf16 %v2758_v32, %v2755_v31  ;;  %5449 = vmatprep.subr.bf16.mxu1 %v7849_v1 }
 0x1c1   : > { %7863 = vst [vmem:[#allocation20_spill] sm:$0xff] %v7100_v19  ;;  %7866 = vst [vmem:[#allocation21_spill] sm:$0xff] %v7106_v38  ;;  %v7123_v51 = vpack.c.bf16 %v7871_v5, %v7870_v63  ;;  %v7134_v62 = vpack.c.bf16 %v3447_v13, %v3444_v36  ;;  %v7136_v41 = vpack.c.bf16 %v2764_v10, %v2761_v40  ;;  %v7877_v49 = vand.u32 4294901760, %v6764_v35 }
 0x1c2   : > { %7869 = vst [vmem:[#allocation22_spill] sm:$0xff] %v7117_v59  ;;  %v7130_v28 = vpack.c.bf16 %v7874_v34, %v7873_v46  ;;  %7876 = vst [vmem:[#allocation25_spill] sm:$0xff] %v7132_v37  ;;  %v7139_v61 = vpack.c.bf16 %v3453_v4, %v3450_v56  ;;  %v7779_v6 = vand.u32 4294901760, %v6752_v43  ;;  %v7778_v9 = vand.u32 4294901760, %v6769_v18 }
 0x1c3   : > { %7872 = vst [vmem:[#allocation23_spill] sm:$0xff] %v7123_v51  ;;  %v2813_v16 = vsub.f32 %v6764_v35, %v7877_v49  ;;  %v7776_v32 = vand.u32 4294901760, %v6757_v7  ;;  %v7768_v13 = vand.u32 4294901760, %v6810_v53  ;;  %v7769_v31 = vand.u32 4294901760, %v6786_v48 }
 0x1c4   : > { %7875 = vst [vmem:[#allocation24_spill] sm:$0xff] %v7130_v28  ;;  %v7771_v36 = vand.u32 4294901760, %v6815_v58  ;;  %v2820_v4 = vsub.f32 %v6752_v43, %v7779_v6  ;;  %v3502_v40 = vsub.f32 %v6769_v18, %v7778_v9  ;;  %v7770_v56 = vand.u32 4294901760, %v6791_v25 }
 0x1c5   : > { %v2814_v10 = vand.u32 4294901760, %v2813_v16  ;;  %v3509_v54 = vsub.f32 %v6757_v7, %v7776_v32  ;;  %v2827_v44 = vsub.f32 %v6810_v53, %v7768_v13  ;;  %v2834_v52 = vsub.f32 %v6786_v48, %v7769_v31 }
 0x1c6   : > { %v3516_v50 = vsub.f32 %v6815_v58, %v7771_v36  ;;  %v2821_v11 = vand.u32 4294901760, %v2820_v4  ;;  %v3503_v24 = vand.u32 4294901760, %v3502_v40  ;;  %v3523_v63 = vsub.f32 %v6791_v25, %v7770_v56  ;;  %5592 = vmatpush3.bf16.xpose.msra.mxu0 %v7100_v19 }
 0x1c7   : > { %v7773_v5 = vand.u32 4294901760, %v6868_v0  ;;  %v3510_v46 = vand.u32 4294901760, %v3509_v54  ;;  %v2828_v34 = vand.u32 4294901760, %v2827_v44  ;;  %v2835_v49 = vand.u32 4294901760, %v2834_v52  ;;  %5593 = vmatprep.subr.bf16.mxu0 %v7849_v1  ;;  %5451 = vmatpush3.bf16.xpose.msra.mxu1 %v7106_v38 }
 0x1c8   : > { %v3517_v16 = vand.u32 4294901760, %v3516_v50  ;;  %v7175_v13 = vpack.c.bf16 %v2821_v11, %v2814_v10  ;;  %v3524_v31 = vand.u32 4294901760, %v3523_v63  ;;  %v7772_v40 = vand.u32 4294901760, %v6856_v45  ;;  %5452 = vmatprep.subr.bf16.mxu1 %v7849_v1 }
 0x1c9   : > { %v2841_v4 = vsub.f32 %v6868_v0, %v7773_v5  ;;  %v7182_v56 = vpack.c.bf16 %v3510_v46, %v3503_v24  ;;  %v7184_v36 = vpack.c.bf16 %v2835_v49, %v2828_v34  ;;  %v7774_v54 = vand.u32 4294901760, %v6873_v30 }
 0x1ca   : > { %v7775_v44 = vand.u32 4294901760, %v6861_v12  ;;  %v7189_v10 = vpack.c.bf16 %v3524_v31, %v3517_v16  ;;  %v2848_v50 = vsub.f32 %v6856_v45, %v7772_v40  ;;  %v7777_v11 = vand.u32 4294901760, %v6923_v55 }
 0x1cb   : > { %v2842_v52 = vand.u32 4294901760, %v2841_v4  ;;  %v3530_v24 = vsub.f32 %v6873_v30, %v7774_v54  ;;  %v7780_v31 = vand.u32 4294901760, %v6878_v14  ;;  %v7781_v46 = vand.u32 4294901760, %v6928_v27 }
 0x1cc   : > { %v3537_v63 = vsub.f32 %v6861_v12, %v7775_v44  ;;  %v2849_v34 = vand.u32 4294901760, %v2848_v50  ;;  %v2855_v49 = vsub.f32 %v6923_v55, %v7777_v11  ;;  %v7782_v16 = vand.u32 4294901760, %v6883_v8 }
 0x1cd   : > { %v7785_v4 = vand.u32 4294901760, %v6978_v26  ;;  %v3531_v40 = vand.u32 4294901760, %v3530_v24  ;;  %v2862_v54 = vsub.f32 %v6878_v14, %v7780_v31  ;;  %v3544_v44 = vsub.f32 %v6928_v27, %v7781_v46 }
 0x1ce   : > { %v3538_v5 = vand.u32 4294901760, %v3537_v63  ;;  %v7215_v32 = vpack.c.bf16 %v2849_v34, %v2842_v52  ;;  %v2856_v50 = vand.u32 4294901760, %v2855_v49  ;;  %v3551_v11 = vsub.f32 %v6883_v8, %v7782_v16  ;;  %5595 = vmatpush3.bf16.xpose.msra.mxu0 %v7117_v59 }
 0x1cf   : > { %v2869_v24 = vsub.f32 %v6978_v26, %v7785_v4  ;;  %v2863_v9 = vand.u32 4294901760, %v2862_v54  ;;  %v3545_v6 = vand.u32 4294901760, %v3544_v44  ;;  %v7783_v31 = vand.u32 4294901760, %v6968_v57  ;;  %5596 = vmatprep.subr.bf16.mxu0 %v7849_v1  ;;  %5454 = vmatpush3.bf16.xpose.msra.mxu1 %v7123_v51 }
 0x1d0   : > { %v7223_v63 = vpack.c.bf16 %v3538_v5, %v3531_v40  ;;  %v3552_v46 = vand.u32 4294901760, %v3551_v11  ;;  %v7784_v34 = vand.u32 4294901760, %v6983_v33  ;;  %v7786_v49 = vand.u32 4294901760, %v6973_v22  ;;  %5455 = vmatprep.subr.bf16.mxu1 %v7849_v1 }
 0x1d1   : > { %v2870_v52 = vand.u32 4294901760, %v2869_v24  ;;  %v7230_v16 = vpack.c.bf16 %v2863_v9, %v2856_v50  ;;  %v2876_v5 = vsub.f32 %v6968_v57, %v7783_v31  ;;  %v7793_v40 = vand.u32 4294901760, %v7024_v39 }
 0x1d2   : > { %7878 = vst [vmem:[#allocation26_spill] sm:$0xff] %v7223_v63  ;;  %v7796_v54 = vand.u32 4294901760, %v7010_v20  ;;  %v7238_v44 = vpack.c.bf16 %v3552_v46, %v3545_v6  ;;  %v3558_v11 = vsub.f32 %v6983_v33, %v7784_v34  ;;  %v3565_v9 = vsub.f32 %v6973_v22, %v7786_v49 }
 0x1d3   : > { %7879 = vst [vmem:[#allocation27_spill] sm:$0xff] %v7230_v16  ;;  %v7797_v50 = vand.u32 4294901760, %v7029_v29  ;;  %v2877_v24 = vand.u32 4294901760, %v2876_v5  ;;  %v2883_v31 = vsub.f32 %v7024_v39, %v7793_v40  ;;  %v7804_v46 = vand.u32 4294901760, %v7015_v23 }
 0x1d4   : > { %7880 = vst [vmem:[#allocation28_spill] sm:$0xff] %v7238_v44  ;;  %v2890_v6 = vsub.f32 %v7010_v20, %v7796_v54  ;;  %v3559_v34 = vand.u32 4294901760, %v3558_v11  ;;  %v3566_v4 = vand.u32 4294901760, %v3565_v9  ;;  %v7802_v51 = vand.u32 4294901760, %v7074_v42 }
 0x1d5   : > { %v3572_v49 = vsub.f32 %v7029_v29, %v7797_v50  ;;  %v7259_v59 = vpack.c.bf16 %v2877_v24, %v2870_v52  ;;  %v2884_v5 = vand.u32 4294901760, %v2883_v31  ;;  %v3579_v40 = vsub.f32 %v7015_v23, %v7804_v46  ;;  %v7884_v52 = vld [vmem:[#allocation17_spill] sm:$0xff]  ;;  %v7885_v31 = vld [vmem:[#allocation16_spill] sm:$0xff] }
 0x1d6   : > { %v2891_v38 = vand.u32 4294901760, %v2890_v6  ;;  %v7264_v19 = vpack.c.bf16 %v3566_v4, %v3559_v34  ;;  %v2897_v11 = vsub.f32 %v7074_v42, %v7802_v51  ;;  %v7803_v9 = vand.u32 4294901760, %v7070_v17  ;;  %5598 = vmatpush3.bf16.xpose.msra.mxu0 %v7130_v28 }
 0x1d7   : > { %7881 = vst [vmem:[#allocation29_spill] sm:$0xff] %v7259_v59  ;;  %v3573_v54 = vand.u32 4294901760, %v3572_v49  ;;  %v3580_v2 = vand.u32 4294901760, %v3579_v40  ;;  %v7807_v24 = vand.u32 4294901760, %v7884_v52  ;;  %v3592_v6 = vand.u32 4294901760, %v7885_v31  ;;  %5599 = vmatprep.subr.bf16.mxu0 %v7849_v1  ;;  %5457 = vmatpush3.bf16.xpose.msra.mxu1 %v7132_v37 }
 0x1d8   : > { %7882 = vst [vmem:[#allocation30_spill] sm:$0xff] %v7264_v19  ;;  %v7270_v50 = vpack.c.bf16 %v2891_v38, %v2884_v5  ;;  %v2898_v21 = vand.u32 4294901760, %v2897_v11  ;;  %v2904_v4 = vsub.f32 %v7070_v17, %v7803_v9  ;;  %v2910_v34 = vand.u32 4294901760, %v7108_v60  ;;  %5458 = vmatprep.subr.bf16.mxu1 %v7849_v1 }
 0x1d9   : > { %v2917_v49 = vand.u32 4294901760, %v7092_v15  ;;  %v7281_v38 = vpack.c.bf16 %v3580_v2, %v3573_v54  ;;  %v3586_v40 = vsub.f32 %v7884_v52, %v7807_v24  ;;  %v3593_v5 = vsub.f32 %v7885_v31, %v3592_v6 }
 0x1da   : > { %7883 = vst [vmem:[#allocation31_spill] sm:$0xff] %v7270_v50  ;;  %v3599_v11 = vand.u32 4294901760, %v7110_v3  ;;  %v2905_v51 = vand.u32 4294901760, %v2904_v4  ;;  %v2911_v9 = vsub.f32 %v7108_v60, %v2910_v34  ;;  %v3606_v28 = vand.u32 4294901760, %v7094_v47 }
 0x1db   : > { %7886 = vst [vmem:[#allocation17_spill] sm:$0xff] %v7281_v38  ;;  %v2918_v46 = vsub.f32 %v7092_v15, %v2917_v49  ;;  %v3587_v2 = vand.u32 4294901760, %v3586_v40  ;;  %v3594_v54 = vand.u32 4294901760, %v3593_v5  ;;  %v7901_v16 = vand.u32 4294901760, %v6861_v12 }
 0x1dc   : > { %v3600_v38 = vsub.f32 %v7110_v3, %v3599_v11  ;;  %v7296_v50 = vpack.c.bf16 %v2905_v51, %v2898_v21  ;;  %v2912_v19 = vand.u32 4294901760, %v2911_v9  ;;  %v3607_v4 = vsub.f32 %v7094_v47, %v3606_v28 }
 0x1dd   : > { %v2919_v37 = vand.u32 4294901760, %v2918_v46  ;;  %v7299_v59 = vpack.c.bf16 %v3594_v54, %v3587_v2  ;;  %v7887_v54 = vand.u32 4294901760, %v6764_v35  ;;  %v7889_v9 = vand.u32 4294901760, %v6769_v18 }
 0x1de   : > { %v3601_v44 = vand.u32 4294901760, %v3600_v38  ;;  %v3608_v63 = vand.u32 4294901760, %v3607_v4  ;;  %5601 = vmatpush3.bf16.xpose.msra.mxu0 %v7134_v62  ;;  %v7888_v4 = vand.u32 4294901760, %v6752_v43  ;;  %v7890_v38 = vand.u32 4294901760, %v6757_v7 }
 0x1df   : > { %v7305_v5 = vpack.c.bf16 %v2919_v37, %v2912_v19  ;;  %5602 = vmatprep.subr.bf16.mxu0 %v7849_v1  ;;  %5460 = vmatpush3.bf16.xpose.msra.mxu1 %v7136_v41  ;;  %v7891_v19 = vand.u32 4294901760, %v6810_v53  ;;  %v7895_v21 = vand.u32 4294901760, %v6791_v25  ;;  %v7904_v24 = vand.u32 4294901760, %v6878_v14 }
 0x1e0   : > { %v5627_v37 = vpack.c.bf16 %v3608_v63, %v3601_v44  ;;  %v7340_v2 = vpack.c.bf16 %v7888_v4, %v7887_v54  ;;  %v7346_v46 = vpack.c.bf16 %v7890_v38, %v7889_v9  ;;  %v7892_v63 = vand.u32 4294901760, %v6786_v48  ;;  %5461 = vmatprep.subr.bf16.mxu1 %v7849_v1 }
 0x1e1   : > { %v7894_v44 = vand.u32 4294901760, %v6815_v58  ;;  %v7897_v54 = vand.u32 4294901760, %v6868_v0  ;;  %v7898_v4 = vand.u32 4294901760, %v6856_v45  ;;  %v7900_v38 = vand.u32 4294901760, %v6873_v30 }
 0x1e2   : > { %v7352_v51 = vpack.c.bf16 %v7892_v63, %v7891_v19  ;;  %v7903_v63 = vand.u32 4294901760, %v6923_v55 }
 0x1e3   : > { %v7358_v40 = vpack.c.bf16 %v7895_v21, %v7894_v44  ;;  %v7365_v9 = vpack.c.bf16 %v7898_v4, %v7897_v54  ;;  %v7371_v19 = vpack.c.bf16 %v7901_v16, %v7900_v38  ;;  %v7906_v44 = vand.u32 4294901760, %v6928_v27 }
 0x1e4   : > { %7893 = vst [vmem:[#allocation16_spill] sm:$0xff] %v7352_v51  ;;  %v7377_v21 = vpack.c.bf16 %v7904_v24, %v7903_v63  ;;  %v7909_v54 = vand.u32 4294901760, %v6978_v26  ;;  %v7910_v4 = vand.u32 4294901760, %v6968_v57  ;;  %v7912_v16 = vand.u32 4294901760, %v6983_v33 }
 0x1e5   : > { %7896 = vst [vmem:[#allocation32_spill] sm:$0xff] %v7358_v40  ;;  %7899 = vst [vmem:[#allocation33_spill] sm:$0xff] %v7365_v9  ;;  %v7907_v40 = vand.u32 4294901760, %v6883_v8  ;;  %v7913_v38 = vand.u32 4294901760, %v6973_v22  ;;  %v7915_v24 = vand.u32 4294901760, %v7024_v39  ;;  %v7916_v63 = vand.u32 4294901760, %v7010_v20 }
 0x1e6   : > { %7902 = vst [vmem:[#allocation34_spill] sm:$0xff] %v7371_v19  ;;  %7905 = vst [vmem:[#allocation35_spill] sm:$0xff] %v7377_v21  ;;  %v7389_v9 = vpack.c.bf16 %v7910_v4, %v7909_v54  ;;  %v7919_v54 = vand.u32 4294901760, %v7074_v42  ;;  %v7920_v4 = vand.u32 4294901760, %v7070_v17  ;;  %5604 = vmatpush3.bf16.xpose.msra.mxu0 %v7139_v61 }
 0x1e7   : > { %v7383_v51 = vpack.c.bf16 %v7907_v40, %v7906_v44  ;;  %v7395_v19 = vpack.c.bf16 %v7913_v38, %v7912_v16  ;;  %v7401_v21 = vpack.c.bf16 %v7916_v63, %v7915_v24  ;;  %v7917_v40 = vand.u32 4294901760, %v7029_v29  ;;  %5605 = vmatprep.subr.bf16.mxu0 %v7849_v1  ;;  %v7922_v63 = vld [vmem:[#allocation10_spill] sm:$0xff] }
 0x1e8   : > { %7911 = vst [vmem:[#allocation37_spill] sm:$0xff] %v7389_v9  ;;  %v7918_v44 = vand.u32 4294901760, %v7015_v23  ;;  %v7413_v9 = vpack.c.bf16 %v7920_v4, %v7919_v54  ;;  %v7921_v16 = vand.u32 4294901760, %v7884_v52  ;;  %v7421_v24 = vpack.c.bf16 %v3606_v28, %v3599_v11  ;;  %4930 = vmatmul.mubr.f32.vlgmr.msra.gmra.mrb[20].mxu1 %v7922_v63  ;;  %v7924_v28 = vld [vmem:[#allocation26_spill] sm:$0xff] }
 0x1e9   : > { %7908 = vst [vmem:[#allocation36_spill] sm:$0xff] %v7383_v51  ;;  %7914 = vst [vmem:[#allocation38_spill] sm:$0xff] %v7395_v19  ;;  %v7419_v19 = vpack.c.bf16 %v2917_v49, %v2910_v34  ;;  %5463 = vmatpush3.bf16.xpose.msra.mxu1 %v7175_v13  ;;  %v7925_v13 = vld [vmem:[#allocation27_spill] sm:$0xff]  ;;  %v7931_v34 = vld [vmem:[#allocation6_spill] sm:$0xff]  ;;  %v7932_v49 = vpack.c.bf16 %v6752_v43, %v6764_v35  ;;  %v7934_v43 = vpack.c.bf16 %v6786_v48, %v6810_v53 }
 0x1ea   : > { %v7407_v51 = vpack.c.bf16 %v7918_v44, %v7917_v40  ;;  %v7417_v38 = vpack.c.bf16 %v3592_v6, %v7921_v16  ;;  %v7923_v40 = vmov 0.0   ;;  %5464 = vmatprep.subr.bf16.mxu1 %v7849_v1  ;;  %v7930_v6 = vld [vmem:[#allocation17_spill] sm:$0xff]  ;;  %v7935_v35 = vpack.c.bf16 %v6791_v25, %v6815_v58 }
 0x1eb   : > { %4964 = vmatprep.mubr.msk.f32.mxu1 %vm5996_vm1, %v7923_v40  ;;  %v7938_v48 = vpack.c.bf16 %v6878_v14, %v6923_v55  ;;  %v7939_v25 = vpack.c.bf16 %v6883_v8, %v6928_v27  ;;  %v7940_v53 = vpack.c.bf16 %v6968_v57, %v6978_v26  ;;  %v7942_v58 = vpack.c.bf16 %v7010_v20, %v7024_v39  ;;  %v7948_v55 = vld [vmem:[#allocation7_spill] sm:$0xff]  ;;  %v7951_v57 = vld [vmem:[#allocation13_spill] sm:$0xff]  ;;  %v7956_v39 = vld [vmem:[#allocation20_spill] sm:$0xff] }
 0x1ec   : > { %v7943_v8 = vpack.c.bf16 %v7015_v23, %v7029_v29  ;;  %v7944_v14 = vpack.c.bf16 %v7070_v17, %v7074_v42  ;;  %v7949_v27 = vld [vmem:[#allocation11_spill] sm:$0xff]  ;;  %v7950_v23 = vld [vmem:[#allocation12_spill] sm:$0xff]  ;;  %v7957_v29 = vld [vmem:[#allocation21_spill] sm:$0xff] }
 0x1ed   : > { %5140 = vmatmul.mubr.f32.vlgmr.msra.gmra.mrb[16].mxu0 %v7922_v63  ;;  %v7953_v26 = vld [vmem:[#allocation15_spill] sm:$0xff]  ;;  %v7961_v42 = vld [vmem:[#allocation25_spill] sm:$0xff] }
 0x1ee   : > { %5607 = vmatpush3.bf16.xpose.msra.mxu0 %v7182_v56  ;;  %5174 = vmatprep.mubr.msk.f32.mxu0 %vm5996_vm1, %v7923_v40  ;;  %v7926_v56 = vld [vmem:[#allocation28_spill] sm:$0xff]  ;;  %v7955_v20 = vld [vmem:[#allocation19_spill] sm:$0xff]  ;;  %v7965_v11 = vld [vmem:[#allocation33_spill] sm:$0xff] }
 0x1ef   : > { %5608 = vmatprep.subr.bf16.mxu0 %v7849_v1  ;;  %v7959_v17 = vld [vmem:[#allocation23_spill] sm:$0xff] }
 0x1f0   : > { %v7970_v44 = vld [vmem:[#allocation38_spill] sm:$0xff] }
 0x1f1   : > { %5466 = vmatpush3.bf16.xpose.msra.mxu1 %v7184_v36  ;;  %v7927_v36 = vld [vmem:[#allocation29_spill] sm:$0xff] }
 0x1f2   : > { %5467 = vmatprep.subr.bf16.mxu1 %v7849_v1 }
 0x1f6   : > { %5610 = vmatpush3.bf16.xpose.msra.mxu0 %v7189_v10  ;;  %v7928_v10 = vld [vmem:[#allocation30_spill] sm:$0xff] }
 0x1f7   : > { %5611 = vmatprep.subr.bf16.mxu0 %v7849_v1 }
 0x1f9   : > { %5469 = vmatpush3.bf16.xpose.msra.mxu1 %v7215_v32  ;;  %v7929_v32 = vld [vmem:[#allocation31_spill] sm:$0xff] }
 0x1fa   : > { %5470 = vmatprep.subr.bf16.mxu1 %v7849_v1 }
 0x1fe   : > { %5613 = vmatpush3.bf16.xpose.msra.mxu0 %v7924_v28 }
 0x1ff   : > { %5614 = vmatprep.subr.bf16.mxu0 %v7849_v1 }
 0x201   : > { %5472 = vmatpush3.bf16.xpose.msra.mxu1 %v7925_v13 }
 0x202   : > { %5473 = vmatprep.subr.bf16.mxu1 %v7849_v1 }
 0x206   : > { %5616 = vmatpush3.bf16.xpose.msra.mxu0 %v7926_v56 }
 0x207   : > { %5617 = vmatprep.subr.bf16.mxu0 %v7849_v1 }
 0x209   : > { %5475 = vmatpush3.bf16.xpose.msra.mxu1 %v7927_v36 }
 0x20a   : > { %5476 = vmatprep.subr.bf16.mxu1 %v7849_v1 }
 0x20e   : > { %5619 = vmatpush3.bf16.xpose.msra.mxu0 %v7928_v10 }
 0x20f   : > { %5620 = vmatprep.subr.bf16.mxu0 %v7849_v1 }
 0x211   : > { %5478 = vmatpush3.bf16.xpose.msra.mxu1 %v7929_v32 }
 0x212   : > { %5479 = vmatprep.subr.bf16.mxu1 %v7849_v1 }
 0x216   : > { %5622 = vmatpush3.bf16.xpose.msra.mxu0 %v7930_v6 }
 0x217   : > { %5623 = vmatprep.subr.bf16.mxu0 %v7849_v1 }
 0x219   : > { %5481 = vmatpush3.bf16.xpose.msra.mxu1 %v7296_v50  ;;  %v5998_v50 = vmov 0  }
 0x21a   : > { %5482 = vmatprep.subr.bf16.mxu1 %v7849_v1  ;;  %5906 = vset.pattern.permute.xlu0 %v5998_v50 }
 0x21e   : > { %5625 = vmatpush3.bf16.xpose.msra.mxu0 %v7299_v59  ;;  %v7933_v59 = vpack.c.bf16 %v6757_v7, %v6769_v18  ;;  %v7936_v7 = vpack.c.bf16 %v6856_v45, %v6868_v0  ;;  %v7937_v18 = vpack.c.bf16 %v6861_v12, %v6873_v30  ;;  %v7941_v30 = vpack.c.bf16 %v6973_v22, %v6983_v33  ;;  %v7952_v22 = vld [vmem:[#allocation14_spill] sm:$0xff] }
 0x21f   : > { %5626 = vmatprep.subr.bf16.mxu0 %v7849_v1  ;;  %v7945_v45 = vpack.c.bf16 %v7885_v31, %v7884_v52  ;;  %v7946_v12 = vpack.c.bf16 %v7092_v15, %v7108_v60  ;;  %v7947_v0 = vpack.c.bf16 %v7094_v47, %v7110_v3  ;;  %v7954_v33 = vld [vmem:[#allocation18_spill] sm:$0xff]  ;;  %v7960_v47 = vld [vmem:[#allocation24_spill] sm:$0xff]  ;;  %v7962_v60 = vld [vmem:[#allocation9_spill] sm:$0xff] }
 0x220   : > { %v7958_v15 = vld [vmem:[#allocation22_spill] sm:$0xff]  ;;  %v390_v3 = vld [vmem:[#allocation2] sm:$0x1]  ;;  %v7963_v52 = vld [vmem:[#allocation16_spill] sm:$0xff] }
 0x221   : > { %5484 = vmatpush3.bf16.xpose.msra.mxu1 %v7305_v5  ;;  %2660 = vperm.xlu0 %5906, %v390_v3   ;;  %v7964_v31 = vld [vmem:[#allocation32_spill] sm:$0xff]  ;;  %v7966_v5 = vld [vmem:[#allocation34_spill] sm:$0xff] }
 0x222   : > { %5485 = vmatprep.subr.bf16.mxu1 %v7849_v1 }
 0x226   : > { %5628 = vmatpush3.bf16.xpose.msra.mxu0 %v5627_v37  ;;  %v7968_v37 = vld [vmem:[#allocation36_spill] sm:$0xff] }
 0x227   : > { %5629 = vmatprep.subr.bf16.mxu0 %v7849_v1 }
 0x228   : > { %4965 = vmatmul.mubr.f32.vlgmr.msra.gmra.mrb[20].mxu1 %v7931_v34 }
 0x229   : > { %5487 = vmatpush3.bf16.xpose.msra.mxu1 %v7932_v49  ;;  %4999 = vmatprep.mubr.msk.f32.mxu1 %vm5996_vm1, %v7923_v40 }
 0x22a   : > { %5488 = vmatprep.subr.bf16.mxu1 %v7849_v1 }
 0x22d   : > { %5175 = vmatmul.mubr.f32.vlgmr.msra.gmra.mrb[16].mxu0 %v7931_v34 }
 0x22e   : > { %5631 = vmatpush3.bf16.xpose.msra.mxu0 %v7933_v59  ;;  %5209 = vmatprep.mubr.msk.f32.mxu0 %vm5996_vm1, %v7923_v40 }
 0x22f   : > { %5632 = vmatprep.subr.bf16.mxu0 %v7849_v1 }
 0x231   : > { %5490 = vmatpush3.bf16.xpose.msra.mxu1 %v7934_v43 }
 0x232   : > { %5491 = vmatprep.subr.bf16.mxu1 %v7849_v1 }
 0x236   : > { %5634 = vmatpush3.bf16.xpose.msra.mxu0 %v7935_v35 }
 0x237   : > { %5635 = vmatprep.subr.bf16.mxu0 %v7849_v1 }
 0x239   : > { %5493 = vmatpush3.bf16.xpose.msra.mxu1 %v7936_v7 }
 0x23a   : > { %5494 = vmatprep.subr.bf16.mxu1 %v7849_v1 }
 0x23e   : > { %5637 = vmatpush3.bf16.xpose.msra.mxu0 %v7937_v18 }
 0x23f   : > { %5638 = vmatprep.subr.bf16.mxu0 %v7849_v1 }
 0x241   : > { %5496 = vmatpush3.bf16.xpose.msra.mxu1 %v7938_v48 }
 0x242   : > { %5497 = vmatprep.subr.bf16.mxu1 %v7849_v1 }
 0x246   : > { %5640 = vmatpush3.bf16.xpose.msra.mxu0 %v7939_v25 }
 0x247   : > { %5641 = vmatprep.subr.bf16.mxu0 %v7849_v1 }
 0x249   : > { %5499 = vmatpush3.bf16.xpose.msra.mxu1 %v7940_v53 }
 0x24a   : > { %5500 = vmatprep.subr.bf16.mxu1 %v7849_v1 }
 0x24e   : > { %5643 = vmatpush3.bf16.xpose.msra.mxu0 %v7941_v30 }
 0x24f   : > { %5644 = vmatprep.subr.bf16.mxu0 %v7849_v1 }
 0x251   : > { %5502 = vmatpush3.bf16.xpose.msra.mxu1 %v7942_v58 }
 0x252   : > { %5503 = vmatprep.subr.bf16.mxu1 %v7849_v1 }
 0x256   : > { %5646 = vmatpush3.bf16.xpose.msra.mxu0 %v7943_v8 }
 0x257   : > { %5647 = vmatprep.subr.bf16.mxu0 %v7849_v1 }
 0x259   : > { %5505 = vmatpush3.bf16.xpose.msra.mxu1 %v7944_v14 }
 0x25a   : > { %5506 = vmatprep.subr.bf16.mxu1 %v7849_v1 }
 0x25e   : > { %5649 = vmatpush3.bf16.xpose.msra.mxu0 %v7945_v45 }
 0x25f   : > { %5650 = vmatprep.subr.bf16.mxu0 %v7849_v1 }
 0x261   : > { %5508 = vmatpush3.bf16.xpose.msra.mxu1 %v7946_v12 }
 0x262   : > { %5509 = vmatprep.subr.bf16.mxu1 %v7849_v1 }
 0x266   : > { %5652 = vmatpush3.bf16.xpose.msra.mxu0 %v7947_v0 }
 0x267   : > { %5653 = vmatprep.subr.bf16.mxu0 %v7849_v1 }
 0x268   : > { %5000 = vmatmul.mubr.f32.vlgmr.msra.gmra.mrb[20].mxu1 %v7948_v55 }
 0x269   : > { %5511 = vmatpush3.bf16.xpose.msra.mxu1 %v7949_v27  ;;  %5034 = vmatprep.mubr.msk.f32.mxu1 %vm5996_vm1, %v7923_v40 }
 0x26a   : > { %5512 = vmatprep.subr.bf16.mxu1 %v7849_v1 }
 0x26d   : > { %5210 = vmatmul.mubr.f32.vlgmr.msra.gmra.mrb[16].mxu0 %v7948_v55 }
 0x26e   : > { %5655 = vmatpush3.bf16.xpose.msra.mxu0 %v7950_v23  ;;  %5244 = vmatprep.mubr.msk.f32.mxu0 %vm5996_vm1, %v7923_v40 }
 0x26f   : > { %5656 = vmatprep.subr.bf16.mxu0 %v7849_v1 }
 0x271   : > { %5514 = vmatpush3.bf16.xpose.msra.mxu1 %v7951_v57 }
 0x272   : > { %5515 = vmatprep.subr.bf16.mxu1 %v7849_v1 }
 0x276   : > { %5658 = vmatpush3.bf16.xpose.msra.mxu0 %v7952_v22 }
 0x277   : > { %5659 = vmatprep.subr.bf16.mxu0 %v7849_v1 }
 0x279   : > { %5517 = vmatpush3.bf16.xpose.msra.mxu1 %v7953_v26 }
 0x27a   : > { %5518 = vmatprep.subr.bf16.mxu1 %v7849_v1 }
 0x27e   : > { %5661 = vmatpush3.bf16.xpose.msra.mxu0 %v7954_v33 }
 0x27f   : > { %5662 = vmatprep.subr.bf16.mxu0 %v7849_v1 }
 0x281   : > { %5520 = vmatpush3.bf16.xpose.msra.mxu1 %v7955_v20 }
 0x282   : > { %5521 = vmatprep.subr.bf16.mxu1 %v7849_v1 }
 0x286   : > { %5664 = vmatpush3.bf16.xpose.msra.mxu0 %v7956_v39 }
 0x287   : > { %5665 = vmatprep.subr.bf16.mxu0 %v7849_v1 }
 0x289   : > { %5523 = vmatpush3.bf16.xpose.msra.mxu1 %v7957_v29 }
 0x28a   : > { %5524 = vmatprep.subr.bf16.mxu1 %v7849_v1 }
 0x28e   : > { %5667 = vmatpush3.bf16.xpose.msra.mxu0 %v7958_v15 }
 0x28f   : > { %5668 = vmatprep.subr.bf16.mxu0 %v7849_v1 }
 0x291   : > { %5526 = vmatpush3.bf16.xpose.msra.mxu1 %v7959_v17 }
 0x292   : > { %5527 = vmatprep.subr.bf16.mxu1 %v7849_v1 }
 0x296   : > { %5670 = vmatpush3.bf16.xpose.msra.mxu0 %v7960_v47 }
 0x297   : > { %5671 = vmatprep.subr.bf16.mxu0 %v7849_v1 }
 0x299   : > { %5529 = vmatpush3.bf16.xpose.msra.mxu1 %v7961_v42 }
 0x29a   : > { %5530 = vmatprep.subr.bf16.mxu1 %v7849_v1 }
 0x29e   : > { %5673 = vmatpush3.bf16.xpose.msra.mxu0 %v7134_v62 }
 0x29f   : > { %5674 = vmatprep.subr.bf16.mxu0 %v7849_v1 }
 0x2a1   : > { %5532 = vmatpush3.bf16.xpose.msra.mxu1 %v7136_v41 }
 0x2a2   : > { %5533 = vmatprep.subr.bf16.mxu1 %v7849_v1 }
 0x2a6   : > { %5676 = vmatpush3.bf16.xpose.msra.mxu0 %v7139_v61 }
 0x2a7   : > { %5677 = vmatprep.subr.bf16.mxu0 %v7849_v1 }
 0x2a8   : > { %5035 = vmatmul.mubr.f32.vlgmr.msra.gmra.mrb[20].mxu1 %v7962_v60 }
 0x2a9   : > { %5535 = vmatpush3.bf16.xpose.msra.mxu1 %v7340_v2  ;;  %5069 = vmatprep.mubr.msk.f32.mxu1 %vm5996_vm1, %v7923_v40  ;;  %v7969_v2 = vld [vmem:[#allocation37_spill] sm:$0xff] }
 0x2aa   : > { %5536 = vmatprep.subr.bf16.mxu1 %v7849_v1 }
 0x2ad   : > { %5245 = vmatmul.mubr.f32.vlgmr.msra.gmra.mrb[16].mxu0 %v7962_v60 }
 0x2ae   : > { %5679 = vmatpush3.bf16.xpose.msra.mxu0 %v7346_v46  ;;  %5279 = vmatprep.mubr.msk.f32.mxu0 %vm5996_vm1, %v7923_v40  ;;  %v7967_v46 = vld [vmem:[#allocation35_spill] sm:$0xff] }
 0x2af   : > { %5680 = vmatprep.subr.bf16.mxu0 %v7849_v1 }
 0x2b1   : > { %5538 = vmatpush3.bf16.xpose.msra.mxu1 %v7963_v52 }
 0x2b2   : > { %5539 = vmatprep.subr.bf16.mxu1 %v7849_v1 }
 0x2b6   : > { %5682 = vmatpush3.bf16.xpose.msra.mxu0 %v7964_v31 }
 0x2b7   : > { %5683 = vmatprep.subr.bf16.mxu0 %v7849_v1 }
 0x2b9   : > { %5541 = vmatpush3.bf16.xpose.msra.mxu1 %v7965_v11 }
 0x2ba   : > { %5542 = vmatprep.subr.bf16.mxu1 %v7849_v1 }
 0x2be   : > { %5685 = vmatpush3.bf16.xpose.msra.mxu0 %v7966_v5 }
 0x2bf   : > { %5686 = vmatprep.subr.bf16.mxu0 %v7849_v1 }
 0x2c1   : > { %5544 = vmatpush3.bf16.xpose.msra.mxu1 %v7967_v46 }
 0x2c2   : > { %5545 = vmatprep.subr.bf16.mxu1 %v7849_v1 }
 0x2c6   : > { %5688 = vmatpush3.bf16.xpose.msra.mxu0 %v7968_v37 }
 0x2c7   : > { %5689 = vmatprep.subr.bf16.mxu0 %v7849_v1 }
 0x2c9   : > { %5547 = vmatpush3.bf16.xpose.msra.mxu1 %v7969_v2 }
 0x2ca   : > { %5548 = vmatprep.subr.bf16.mxu1 %v7849_v1 }
 0x2ce   : > { %5691 = vmatpush3.bf16.xpose.msra.mxu0 %v7970_v44 }
 0x2cf   : > { %5692 = vmatprep.subr.bf16.mxu0 %v7849_v1 }
 0x2d1   : > { %5550 = vmatpush3.bf16.xpose.msra.mxu1 %v7401_v21 }
 0x2d2   : > { %5551 = vmatprep.subr.bf16.mxu1 %v7849_v1 }
 0x2d6   : > { %5694 = vmatpush3.bf16.xpose.msra.mxu0 %v7407_v51  ;;  %v2661_v51 = vpop.permute.xlu0 %2660 }
 0x2d7   : > { %5695 = vmatprep.subr.bf16.mxu0 %v7849_v1 }
 0x2d9   : > { %5553 = vmatpush3.bf16.xpose.msra.mxu1 %v7413_v9  ;;  %v7971_v9 = vld [vmem:[#allocation8_spill] sm:$0xff] }
 0x2da   : > { %5554 = vmatprep.subr.bf16.mxu1 %v7849_v1 }
 0x2de   : > { %5697 = vmatpush3.bf16.xpose.msra.mxu0 %v7417_v38 }
 0x2df   : > { %5698 = vmatprep.subr.bf16.mxu0 %v7849_v1 }
 0x2e1   : > { %5556 = vmatpush3.bf16.xpose.msra.mxu1 %v7419_v19  ;;  %v2666_v19 = vrot.slane %v2661_v51, %v7971_v9 }
 0x2e2   : > { %5557 = vmatprep.subr.bf16.mxu1 %v7849_v1 }
 0x2e6   : > { %5700 = vmatpush3.bf16.xpose.msra.mxu0 %v7421_v24 }
 0x2e7   : > { %5701 = vmatprep.subr.bf16.mxu0 %v7849_v1 }
 0x2e8   : > { %5070 = vmatmul.mubr.f32.vlgmr.msra.gmra.mrb[20].mxu1 %v7931_v34 }
 0x2e9   : > { %5559 = vmatpush3.bf16.xpose.msra.mxu1 %v7949_v27  ;;  %5104 = vmatprep.mubr.msk.f32.mxu1 %vm5996_vm1, %v7923_v40 }
 0x2ea   : > { %5560 = vmatprep.subr.bf16.mxu1 %v7849_v1 }
 0x2ed   : > { %5280 = vmatmul.mubr.f32.vlgmr.msra.gmra.mrb[16].mxu0 %v7931_v34 }
 0x2ee   : > { %5703 = vmatpush3.bf16.xpose.msra.mxu0 %v7950_v23  ;;  %5314 = vmatprep.mubr.msk.f32.mxu0 %vm5996_vm1, %v7923_v40 }
 0x2ef   : > { %5704 = vmatprep.subr.bf16.mxu0 %v7849_v1 }
 0x2f1   : > { %5562 = vmatpush3.bf16.xpose.msra.mxu1 %v7951_v57 }
 0x2f2   : > { %5563 = vmatprep.subr.bf16.mxu1 %v7849_v1 }
 0x2f6   : > { %5706 = vmatpush3.bf16.xpose.msra.mxu0 %v7952_v22 }
 0x2f7   : > { %5707 = vmatprep.subr.bf16.mxu0 %v7849_v1 }
 0x2f9   : > { %5565 = vmatpush3.bf16.xpose.msra.mxu1 %v7953_v26 }
 0x2fa   : > { %5566 = vmatprep.subr.bf16.mxu1 %v7849_v1 }
 0x2fe   : > { %5709 = vmatpush3.bf16.xpose.msra.mxu0 %v7954_v33 }
 0x2ff   : > { %5710 = vmatprep.subr.bf16.mxu0 %v7849_v1 }
 0x301   : > { %5568 = vmatpush3.bf16.xpose.msra.mxu1 %v7955_v20 }
 0x302   : > { %5569 = vmatprep.subr.bf16.mxu1 %v7849_v1 }
 0x306   : > { %5712 = vmatpush3.bf16.xpose.msra.mxu0 %v7956_v39 }
 0x307   : > { %5713 = vmatprep.subr.bf16.mxu0 %v7849_v1 }
 0x309   : > { %5571 = vmatpush3.bf16.xpose.msra.mxu1 %v7957_v29 }
 0x30a   : > { %5572 = vmatprep.subr.bf16.mxu1 %v7849_v1 }
 0x30e   : > { %5715 = vmatpush3.bf16.xpose.msra.mxu0 %v7958_v15 }
 0x30f   : > { %5716 = vmatprep.subr.bf16.mxu0 %v7849_v1 }
 0x311   : > { %5574 = vmatpush3.bf16.xpose.msra.mxu1 %v7959_v17 }
 0x312   : > { %5575 = vmatprep.subr.bf16.mxu1 %v7849_v1 }
 0x316   : > { %5718 = vmatpush3.bf16.xpose.msra.mxu0 %v7960_v47 }
 0x317   : > { %5719 = vmatprep.subr.bf16.mxu0 %v7849_v1 }
 0x319   : > { %5577 = vmatpush3.bf16.xpose.msra.mxu1 %v7961_v42 }
 0x31a   : > { %5578 = vmatprep.subr.bf16.mxu1 %v7849_v1 }
 0x31e   : > { %5721 = vmatpush3.bf16.xpose.msra.mxu0 %v7134_v62 }
 0x31f   : > { %5722 = vmatprep.subr.bf16.mxu0 %v7849_v1 }
 0x321   : > { %5580 = vmatpush3.bf16.xpose.msra.mxu1 %v7136_v41 }
 0x326   : > { %5724 = vmatpush3.bf16.xpose.msra.mxu0 %v7139_v61 }
 0x328   : > { %5105 = vmatmul.mubr.f32.vlgmr.msra.gmra.mrb[20].mxu1 %v7931_v34 }
 0x32d   : > { %5315 = vmatmul.mubr.f32.vlgmr.msra.gmra.mrb[16].mxu0 %v7931_v34 }
 0x3fb   : > { %v3355_v21 = vpop.f32.mrb[20].mxu1 }
 0x3fc   : > { %v5741_v54 = vadd.f32 %v3355_v21, %v2666_v19  ;;  %v5106_v4 = vpop.f32.mrb[21].mxu1 }
 0x3fe   : > { %v4182_v16 = vmul.f32 -1.442695, %v5741_v54 }
 0x400   : > { %v4044_v62 = vpop.f32.mrb[16].mxu0  ;;  %5907 = vpow2.f32 %v4182_v16 }
 0x401   : > { %v5742_v38 = vadd.f32 %v4044_v62, %v2666_v19  ;;  %v5316_v1 = vpop.f32.mrb[17].mxu0 }
 0x403   : > { %v4183_v41 = vmul.f32 -1.442695, %v5742_v38 }
 0x405   : > { %5909 = vpow2.f32 %v4183_v41 }
 0x40a   : > { %v5908_v61 = vpop.eup %5907 }
 0x40b   : > { %v4051_v63 = vadd.f32 1.0, %v5908_v61 }
 0x40f   : > { %v5910_v24 = vpop.eup %5909 }
 0x410   : > { %v4057_v40 = vadd.f32 1.0, %v5910_v24 }
 0x412   : > { %5911 = vrcp.f32 %v4057_v40 }
 0x413   : > { %5913 = vrcp.f32 %v4051_v63 }
 0x41c   : > { %v5912_v28 = vpop.eup %5911 }
 0x41d   : > { %v4061_v13 = vrot.slane %v5912_v28, 7  ;;  %v5914_v56 = vpop.eup %5913 }
 0x41f   : > { %v4064_v36 = vsel %vm4063_vm2, %v5914_v56, %v4061_v13 }
 0x420   : > { %4065 = vst [vmem:[%s347_s28] sm:$0x3] %v4064_v36 }
 0x421   : > { %5928 = shalt.err (!%p5925_p5)
}
 0x422   : > { %s5929_s24 = scalar_lea.hbm %s7652_s20, 32  ;;  %s5933_s27 = scalar_lea.hbm %s7707_s8, 64 }
 0x423   : > { %p5930_p6 = scmp.ne.s32.totalorder %s7652_s20, %s5929_s24  ;;  %p5934_p10 = scmp.lt.u32.totalorder %s7652_s20, %s7707_s8 }
 0x424   : > { %p5935_p11 = scmp.lt.u32.totalorder %s5933_s27, %s5929_s24  ;;  %p5937_p13 = scmp.lt.u32.totalorder %s5929_s24, %s7652_s20 }
 0x425   : > { %p5931_p7 = pnand %p5930_p6, %p6088_p4 }
 0x426   : > { %p5936_p12 = por %p5935_p11, %p5934_p10 }
 0x427   : > { %p5932_p9 = pneg %p5931_p7 }
 0x428   : > { %p5938_p0 = por %p5937_p13, %p5936_p12 }
 0x42a   : > { %p5939_p1 = pnand %p5938_p0, %p5932_p9 }
 0x42c   : > { %5942 = shalt.err (!%p5939_p1)
}
 0x42d   : > { %5847 = dma.vmem_to_hbm [thread:$0]  (%p6088_p4), %s7654_s7, 32, %s7652_s20, %s4067_s21  }
 0x42e PF: > { %p5853_p2 = scmp.ge.s32.totalorder %s5993_s12, 2  ;;  %s4093_s15 = sand.u32 1, %s5973_s29  }
 0x42f   : > { %s4094_s10 = scalar_lea.sflag [#allocation4], %s4093_s15 }
 0x430   : > { %p5850_p3 = pnand %p5853_p2, %p6095_p8 }
 0x432   : > { %5968 = dma.done.wait (!%p5850_p3), %s4094_s10, 32  }
 0x433   : > { %5970 = vsyncadd (!%p5850_p3), %s4094_s10, 4294967264  ;;  %s23_s12 = sadd.s32 1, %s5993_s12   ;;  %s7972_s29 = smov %s5977_s30 }
 0x434   : > { %p20_p5 = scmp.ge.s32.totalorder %s23_s12, 4   ;;  %s7973_s30 = smov %s5981_s9 }
 0x435   : > { %s7974_s9 = smov %s6101_s19  ;;  %s7975_s10 = smov %s5989_s11 }
 0x436   : > { %s7976_s11 = smov %s7978_s14  ;;  %22 = sbr.rel (!%p20_p5) target bundleno = 7 (0x7), region = 93 }
 0x43d   :  { %4099 = vsyncpa [#allocation4], 1 }
 0x43e   :  { %4101 = vsyncpa [#allocation4 + $0x1], 1 }

</bundles_post_ra>
